<compile_context>
chip_gen: v7x
topology: tpu7x:2x2x1
jax: 0.10.0
libtpu: 0.0.40
codegen_flags: <defaults>
</compile_context>

<pallas_src>
import functools

import jax
import jax.numpy as jnp
from jax.experimental import pallas as pl
from jax.experimental.pallas import tpu as pltpu

# Make the pure-JAX reference (and in-kernel dots) use full-f32 matmul so the
# correctness check is tight.
jax.config.update("jax_default_matmul_precision", "highest")

LN_EPS = 1e-5


# ------------------------------ fused kernel --------------------------------


def _pos_update_kernel(
    # data
    h_node_ref, h_edge_ref, left_col_ref, right_col_ref, left_row_ref,
    rel_ref, dist_ref, time_ref,
    # left/right node MLPs (first linears merged along the output dim)
    w1lr_ref, b1lr_ref, ln1g_ref, ln1b_ref, w2l_ref, b2l_ref, w2r_ref, b2r_ref,
    # BondFFN
    bondw_ref, nodew_ref,
    wi1_ref, bi1_ref, lnig_ref, lnib_ref, wi2_ref, bi2_ref,          # inter MLP
    wgb_ref, wgn_ref, wgt_ref, bg1_ref, lngg_ref, lngb_ref, wg2_ref, bg2_ref,  # gate MLP
    # output
    out_ref,
    *, hidden_dim):
    f32 = jnp.float32

    def _ln(v):
        m = jnp.mean(v, axis=-1, keepdims=True)
        c = v - m
        var = jnp.mean(c * c, axis=-1, keepdims=True)
        return c * jax.lax.rsqrt(var + LN_EPS)

    # ---- left/right node MLPs on the N node rows (merged first matmul) ----
    h_node = h_node_ref[...]                                            # (N, node_dim)
    y = jnp.dot(h_node, w1lr_ref[...], preferred_element_type=f32) + b1lr_ref[...]
    g1, bb1 = ln1g_ref[...], ln1b_ref[...]
    yl = jnp.maximum(_ln(y[:, :hidden_dim]) * g1[:, :hidden_dim] + bb1[:, :hidden_dim], 0.0)
    yr = jnp.maximum(_ln(y[:, hidden_dim:]) * g1[:, hidden_dim:] + bb1[:, hidden_dim:], 0.0)
    left_nodes = jnp.dot(yl, w2l_ref[...], preferred_element_type=f32) + b2l_ref[...]
    right_nodes = jnp.dot(yr, w2r_ref[...], preferred_element_type=f32) + b2r_ref[...]

    # ---- in-kernel gather per edge via one-hot matmuls ----
    n = h_node.shape[0]
    e = h_edge_ref.shape[0]
    col_iota = jax.lax.broadcasted_iota(jnp.int32, (e, n), 1)
    oh_l = (col_iota == left_col_ref[...]).astype(f32)                  # (E, N)
    oh_r = (col_iota == right_col_ref[...]).astype(f32)
    left_feat = jnp.dot(oh_l, left_nodes, preferred_element_type=f32)   # (E, edge_dim)
    right_feat = jnp.dot(oh_r, right_nodes, preferred_element_type=f32)
    prod = left_feat * right_feat                                       # (E, edge_dim)

    # ---- BondFFN ----
    h_edge = h_edge_ref[...]
    bond_feat = jnp.dot(h_edge, bondw_ref[...], preferred_element_type=f32)
    node_feat = jnp.dot(prod, nodew_ref[...], preferred_element_type=f32)
    inter = bond_feat * node_feat                                       # (E, inter_dim)

    hi = jnp.dot(inter, wi1_ref[...], preferred_element_type=f32) + bi1_ref[...]
    hi = jnp.maximum(_ln(hi) * lnig_ref[...] + lnib_ref[...], 0.0)
    # second linear (out_dim=1) as VPU-mul + lane reduce (avoids a 1-lane matmul)
    w_edge = jnp.sum(hi * wi2_ref[...], axis=-1, keepdims=True) + bi2_ref[...]   # (E, 1)

    # gate MLP: concat([h_edge, prod, time]) @ Wg1 done as split partial matmuls
    hg = (jnp.dot(h_edge, wgb_ref[...], preferred_element_type=f32)
          + jnp.dot(prod, wgn_ref[...], preferred_element_type=f32)
          + time_ref[...] * wgt_ref[...]
          + bg1_ref[...])
    hg = jnp.maximum(_ln(hg) * lngg_ref[...] + lngb_ref[...], 0.0)
    gate = jnp.sum(hg * wg2_ref[...], axis=-1, keepdims=True) + bg2_ref[...]     # (E, 1)
    w_edge = w_edge * jax.nn.sigmoid(gate)

    # ---- force + fused scatter_sum ----
    d = dist_ref[...]                                                   # (E, 1), d > 0
    inv = pl.reciprocal(d * d + d, approx=True)                         # 1 / (d * (d + 1))
    force = w_edge * rel_ref[...] * inv                                 # (E, 3)

    scat = (jax.lax.broadcasted_iota(jnp.int32, (n, e), 0)
            == left_row_ref[...]).astype(f32)                           # (N, E) one-hot
    out_ref[...] = jnp.dot(scat, force, preferred_element_type=f32)     # (N, 3)


# ------------------------------ wrapper --------------------------------------


def _full_spec(x):
    nd = x.ndim
    return pl.BlockSpec(x.shape, lambda i, nd=nd: (0,) * nd)


def pack_params(p):
    """Flatten / merge PosUpdate params into the kernel's operand order."""
    L, R, el = p["left_lin"], p["right_lin"], p["edge_lin"]
    edge_dim = el["bond_W"].shape[0]
    gW1 = el["gate"]["W1"]                       # (2*edge_dim + 1, 32)
    return (
        jnp.concatenate([L["W1"], R["W1"]], axis=1),            # w1lr  (node_dim, 2H)
        jnp.concatenate([L["b1"], R["b1"]])[None, :],           # b1lr  (1, 2H)
        jnp.concatenate([L["g"], R["g"]])[None, :],             # ln1g  (1, 2H)
        jnp.concatenate([L["bb"], R["bb"]])[None, :],           # ln1b  (1, 2H)
        L["W2"], L["b2"][None, :],                              # (H, edge_dim), (1, edge_dim)
        R["W2"], R["b2"][None, :],
        el["bond_W"], el["node_W"],                             # (edge_dim, inter_dim)
        el["inter"]["W1"], el["inter"]["b1"][None, :],
        el["inter"]["g"][None, :], el["inter"]["bb"][None, :],
        el["inter"]["W2"].reshape(1, -1), el["inter"]["b2"][None, :],
        gW1[:edge_dim], gW1[edge_dim:2 * edge_dim], gW1[2 * edge_dim:],
        el["gate"]["b1"][None, :],
        el["gate"]["g"][None, :], el["gate"]["bb"][None, :],
        el["gate"]["W2"].reshape(1, -1), el["gate"]["b2"][None, :],
    )


def pos_update_forward(params, h_node, h_edge, edge_index, rel_vec, distance, edge_time):
    n = h_node.shape[0]
    e = h_edge.shape[0]
    hidden = params["left_lin"]["W1"].shape[1]
    left = edge_index[0].astype(jnp.int32)
    right = edge_index[1].astype(jnp.int32)

    data = (
        h_node.astype(jnp.float32),
        h_edge.astype(jnp.float32),
        left.reshape(e, 1),                    # gather one-hot (E, N)
        right.reshape(e, 1),
        left.reshape(1, e),                    # scatter one-hot (N, E)
        rel_vec.astype(jnp.float32),
        distance.astype(jnp.float32).reshape(e, 1),
        edge_time.astype(jnp.float32).reshape(e, 1),
    )
    inputs = data + pack_params(params)

    return pl.pallas_call(
        functools.partial(_pos_update_kernel, hidden_dim=hidden),
        grid=(1,),
        in_specs=[_full_spec(x) for x in inputs],
        out_specs=pl.BlockSpec((n, 3), lambda i: (0, 0)),
        out_shape=jax.ShapeDtypeStruct((n, 3), jnp.float32),
        compiler_params=pltpu.CompilerParams(dimension_semantics=("arbitrary",)),
    )(*inputs)


# ------------------------------ parameter init -------------------------------


def _init_linear(key, din, dout, bias=True):
    kw, kb = jax.random.split(key)
    s = 1.0 / (din ** 0.5)
    w = jax.random.uniform(kw, (din, dout), jnp.float32, -s, s)
    b = jax.random.uniform(kb, (dout,), jnp.float32, -s, s) if bias else None
    return w, b


def _init_mlp(key, din, dout, dhid):
    k1, k2 = jax.random.split(key)
    w1, b1 = _init_linear(k1, din, dhid)
    w2, b2 = _init_linear(k2, dhid, dout)
    return {"W1": w1, "b1": b1,
            "g": jnp.ones((dhid,), jnp.float32), "bb": jnp.zeros((dhid,), jnp.float32),
            "W2": w2, "b2": b2}


def init_params(key, node_dim, edge_dim, hidden_dim):
    ks = jax.random.split(key, 6)
    inter_dim = node_dim                        # BondFFN(edge_dim, edge_dim, node_dim, ..., out_dim=1)
    return {
        "left_lin": _init_mlp(ks[0], node_dim, edge_dim, hidden_dim),
        "right_lin": _init_mlp(ks[1], node_dim, edge_dim, hidden_dim),
        "edge_lin": {
            "bond_W": _init_linear(ks[2], edge_dim, inter_dim, bias=False)[0],
            "node_W": _init_linear(ks[3], edge_dim, inter_dim, bias=False)[0],
            "inter": _init_mlp(ks[4], inter_dim, 1, inter_dim),
            "gate": _init_mlp(ks[5], edge_dim + edge_dim + 1, 1, 32),
        },
    }


# ------------------------------ pure-JAX reference ---------------------------


def _mlp_ref(p, x):
    h = x @ p["W1"] + p["b1"]
    mu = h.mean(-1, keepdims=True)
    var = ((h - mu) ** 2).mean(-1, keepdims=True)
    h = (h - mu) / jnp.sqrt(var + LN_EPS) * p["g"] + p["bb"]
    h = jnp.maximum(h, 0.0)
    return h @ p["W2"] + p["b2"]


def pos_update_ref(params, h_node, h_edge, edge_index, rel_vec, distance, edge_time):
    left, right = edge_index[0], edge_index[1]
    lf = _mlp_ref(params["left_lin"], h_node[left])
    rf = _mlp_ref(params["right_lin"], h_node[right])
    prod = lf * rf
    el = params["edge_lin"]
    inter = (h_edge @ el["bond_W"]) * (prod @ el["node_W"])
    w = _mlp_ref(el["inter"], inter)
    gate = _mlp_ref(el["gate"], jnp.concatenate([h_edge, prod, edge_time], axis=-1))
    w = w * jax.nn.sigmoid(gate)
    d = distance[:, None]
    force = w * rel_vec / d / (d + 1.0)
    return jnp.zeros((h_node.shape[0], 3), jnp.float32).at[left].add(force)


# ------------------------------ main ------------------------------------------


if __name__ == "__main__":
    N, E = 16, 32
    NODE_DIM, EDGE_DIM, HIDDEN_DIM = 32, 16, 32

    key = jax.random.PRNGKey(0)
    ks = jax.random.split(key, 6)
    h_node = jax.random.normal(ks[0], (N, NODE_DIM), jnp.float32)
    h_edge = jax.random.normal(ks[1], (E, EDGE_DIM), jnp.float32)
    left = jax.random.randint(ks[2], (E,), 0, N, dtype=jnp.int32)
    offs = jax.random.randint(ks[3], (E,), 1, N, dtype=jnp.int32)
    right = (left + offs) % N                               # no self-loops -> distance > 0
    edge_index = jnp.stack([left, right], axis=0)
    rel_vec = jax.random.normal(ks[4], (E, 3), jnp.float32)
    distance = jnp.sqrt(jnp.sum(rel_vec * rel_vec, axis=-1))
    edge_time = jax.random.uniform(ks[5], (E, 1), jnp.float32)

    params = init_params(jax.random.PRNGKey(42), NODE_DIM, EDGE_DIM, HIDDEN_DIM)

    fwd = jax.jit(pos_update_forward)
    delta_pos = fwd(params, h_node, h_edge, edge_index, rel_vec, distance, edge_time)
    jax.block_until_ready(delta_pos)

    ref = pos_update_ref(params, h_node, h_edge, edge_index, rel_vec, distance, edge_time)

    assert delta_pos.shape == (N, 3)
    assert bool(jnp.all(jnp.isfinite(delta_pos)))
    # approx reciprocal (EUP vrcp) -> loose-ish tolerance
    assert bool(jnp.allclose(delta_pos, ref, rtol=2e-2, atol=2e-3)), (
        float(jnp.max(jnp.abs(delta_pos - ref))))
    print("KERNEL_OK")
</pallas_src>

<mosaic_0001>
module attributes {stable_mosaic.version = 11 : i64} {
  func.func @_pos_update_kernel(%arg0: i32, %arg1: memref<16x32xf32, #tpu.memory_space<vmem>>, %arg2: memref<32x16xf32, #tpu.memory_space<vmem>>, %arg3: memref<32x1xi32, #tpu.memory_space<vmem>>, %arg4: memref<32x1xi32, #tpu.memory_space<vmem>>, %arg5: memref<1x32xi32, #tpu.memory_space<vmem>>, %arg6: memref<32x3xf32, #tpu.memory_space<vmem>>, %arg7: memref<32x1xf32, #tpu.memory_space<vmem>>, %arg8: memref<32x1xf32, #tpu.memory_space<vmem>>, %arg9: memref<32x64xf32, #tpu.memory_space<vmem>>, %arg10: memref<1x64xf32, #tpu.memory_space<vmem>>, %arg11: memref<1x64xf32, #tpu.memory_space<vmem>>, %arg12: memref<1x64xf32, #tpu.memory_space<vmem>>, %arg13: memref<32x16xf32, #tpu.memory_space<vmem>>, %arg14: memref<1x16xf32, #tpu.memory_space<vmem>>, %arg15: memref<32x16xf32, #tpu.memory_space<vmem>>, %arg16: memref<1x16xf32, #tpu.memory_space<vmem>>, %arg17: memref<16x32xf32, #tpu.memory_space<vmem>>, %arg18: memref<16x32xf32, #tpu.memory_space<vmem>>, %arg19: memref<32x32xf32, #tpu.memory_space<vmem>>, %arg20: memref<1x32xf32, #tpu.memory_space<vmem>>, %arg21: memref<1x32xf32, #tpu.memory_space<vmem>>, %arg22: memref<1x32xf32, #tpu.memory_space<vmem>>, %arg23: memref<1x32xf32, #tpu.memory_space<vmem>>, %arg24: memref<1x1xf32, #tpu.memory_space<vmem>>, %arg25: memref<16x32xf32, #tpu.memory_space<vmem>>, %arg26: memref<16x32xf32, #tpu.memory_space<vmem>>, %arg27: memref<1x32xf32, #tpu.memory_space<vmem>>, %arg28: memref<1x32xf32, #tpu.memory_space<vmem>>, %arg29: memref<1x32xf32, #tpu.memory_space<vmem>>, %arg30: memref<1x32xf32, #tpu.memory_space<vmem>>, %arg31: memref<1x32xf32, #tpu.memory_space<vmem>>, %arg32: memref<1x1xf32, #tpu.memory_space<vmem>>, %arg33: memref<16x3xf32, #tpu.memory_space<vmem>>) attributes {dimension_semantics = [#tpu.dimension_semantics<arbitrary>], iteration_bounds = array<i64: 1>, scalar_prefetch = 0 : i64, scratch_operands = 0 : i64, tpu.core_type = #tpu.core_type<tc>, window_params = [{pipeline_mode = #tpu.pipeline_mode<synchronous>, transform_indices = @transform_0, window_bounds = array<i64: 16, 32>}, {pipeline_mode = #tpu.pipeline_mode<synchronous>, transform_indices = @transform_1, window_bounds = array<i64: 32, 16>}, {pipeline_mode = #tpu.pipeline_mode<synchronous>, transform_indices = @transform_2, window_bounds = array<i64: 32, 1>}, {pipeline_mode = #tpu.pipeline_mode<synchronous>, transform_indices = @transform_3, window_bounds = array<i64: 32, 1>}, {pipeline_mode = #tpu.pipeline_mode<synchronous>, transform_indices = @transform_4, window_bounds = array<i64: 1, 32>}, {pipeline_mode = #tpu.pipeline_mode<synchronous>, transform_indices = @transform_5, window_bounds = array<i64: 32, 3>}, {pipeline_mode = #tpu.pipeline_mode<synchronous>, transform_indices = @transform_6, window_bounds = array<i64: 32, 1>}, {pipeline_mode = #tpu.pipeline_mode<synchronous>, transform_indices = @transform_7, window_bounds = array<i64: 32, 1>}, {pipeline_mode = #tpu.pipeline_mode<synchronous>, transform_indices = @transform_8, window_bounds = array<i64: 32, 64>}, {pipeline_mode = #tpu.pipeline_mode<synchronous>, transform_indices = @transform_9, window_bounds = array<i64: 1, 64>}, {pipeline_mode = #tpu.pipeline_mode<synchronous>, transform_indices = @transform_10, window_bounds = array<i64: 1, 64>}, {pipeline_mode = #tpu.pipeline_mode<synchronous>, transform_indices = @transform_11, window_bounds = array<i64: 1, 64>}, {pipeline_mode = #tpu.pipeline_mode<synchronous>, transform_indices = @transform_12, window_bounds = array<i64: 32, 16>}, {pipeline_mode = #tpu.pipeline_mode<synchronous>, transform_indices = @transform_13, window_bounds = array<i64: 1, 16>}, {pipeline_mode = #tpu.pipeline_mode<synchronous>, transform_indices = @transform_14, window_bounds = array<i64: 32, 16>}, {pipeline_mode = #tpu.pipeline_mode<synchronous>, transform_indices = @transform_15, window_bounds = array<i64: 1, 16>}, {pipeline_mode = #tpu.pipeline_mode<synchronous>, transform_indices = @transform_16, window_bounds = array<i64: 16, 32>}, {pipeline_mode = #tpu.pipeline_mode<synchronous>, transform_indices = @transform_17, window_bounds = array<i64: 16, 32>}, {pipeline_mode = #tpu.pipeline_mode<synchronous>, transform_indices = @transform_18, window_bounds = array<i64: 32, 32>}, {pipeline_mode = #tpu.pipeline_mode<synchronous>, transform_indices = @transform_19, window_bounds = array<i64: 1, 32>}, {pipeline_mode = #tpu.pipeline_mode<synchronous>, transform_indices = @transform_20, window_bounds = array<i64: 1, 32>}, {pipeline_mode = #tpu.pipeline_mode<synchronous>, transform_indices = @transform_21, window_bounds = array<i64: 1, 32>}, {pipeline_mode = #tpu.pipeline_mode<synchronous>, transform_indices = @transform_22, window_bounds = array<i64: 1, 32>}, {pipeline_mode = #tpu.pipeline_mode<synchronous>, transform_indices = @transform_23, window_bounds = array<i64: 1, 1>}, {pipeline_mode = #tpu.pipeline_mode<synchronous>, transform_indices = @transform_24, window_bounds = array<i64: 16, 32>}, {pipeline_mode = #tpu.pipeline_mode<synchronous>, transform_indices = @transform_25, window_bounds = array<i64: 16, 32>}, {pipeline_mode = #tpu.pipeline_mode<synchronous>, transform_indices = @transform_26, window_bounds = array<i64: 1, 32>}, {pipeline_mode = #tpu.pipeline_mode<synchronous>, transform_indices = @transform_27, window_bounds = array<i64: 1, 32>}, {pipeline_mode = #tpu.pipeline_mode<synchronous>, transform_indices = @transform_28, window_bounds = array<i64: 1, 32>}, {pipeline_mode = #tpu.pipeline_mode<synchronous>, transform_indices = @transform_29, window_bounds = array<i64: 1, 32>}, {pipeline_mode = #tpu.pipeline_mode<synchronous>, transform_indices = @transform_30, window_bounds = array<i64: 1, 32>}, {pipeline_mode = #tpu.pipeline_mode<synchronous>, transform_indices = @transform_31, window_bounds = array<i64: 1, 1>}, {pipeline_mode = #tpu.pipeline_mode<synchronous>, transform_indices = @transform_32, window_bounds = array<i64: 16, 3>}]} {
    %c0 = arith.constant 0 : index
    %c0_0 = arith.constant 0 : index
    %0 = vector.load %arg1[%c0, %c0_0] : memref<16x32xf32, #tpu.memory_space<vmem>>, vector<16x32xf32>
    %c0_1 = arith.constant 0 : index
    %c0_2 = arith.constant 0 : index
    %1 = vector.load %arg9[%c0_1, %c0_2] : memref<32x64xf32, #tpu.memory_space<vmem>>, vector<32x64xf32>
    %cst = arith.constant dense<0.000000e+00> : vector<16x64xf32>
    %2 = tpu.matmul %0, %1, %cst {dimension_numbers = #tpu.dot_dimension_numbers<[1], [0], [0], [1], [0, 0, 1, 1], [], []>, precision = #tpu.contract_precision<fp32>} : vector<16x32xf32>, vector<32x64xf32>, vector<16x64xf32> -> vector<16x64xf32>
    %c0_3 = arith.constant 0 : index
    %c0_4 = arith.constant 0 : index
    %3 = vector.load %arg10[%c0_3, %c0_4] : memref<1x64xf32, #tpu.memory_space<vmem>>, vector<1x64xf32>
    %4 = vector.broadcast %3 : vector<1x64xf32> to vector<16x64xf32>
    %5 = arith.addf %2, %4 : vector<16x64xf32>
    %c0_5 = arith.constant 0 : index
    %c0_6 = arith.constant 0 : index
    %6 = vector.load %arg11[%c0_5, %c0_6] : memref<1x64xf32, #tpu.memory_space<vmem>>, vector<1x64xf32>
    %c0_7 = arith.constant 0 : index
    %c0_8 = arith.constant 0 : index
    %7 = vector.load %arg12[%c0_7, %c0_8] : memref<1x64xf32, #tpu.memory_space<vmem>>, vector<1x64xf32>
    %8 = vector.extract_strided_slice %5 {offsets = [0, 0], sizes = [16, 32], strides = [1, 1]} : vector<16x64xf32> to vector<16x32xf32>
    %cst_9 = arith.constant dense<0.000000e+00> : vector<16xf32>
    %9 = vector.multi_reduction <add>, %8, %cst_9 [1] : vector<16x32xf32> to vector<16xf32>
    %10 = vector.shape_cast %9 : vector<16xf32> to vector<16x1xf32>
    %cst_10 = arith.constant 3.200000e+01 : f32
    %11 = vector.broadcast %cst_10 : f32 to vector<16x1xf32>
    %12 = arith.divf %10, %11 : vector<16x1xf32>
    %13 = vector.broadcast %12 : vector<16x1xf32> to vector<16x32xf32>
    %14 = arith.subf %8, %13 : vector<16x32xf32>
    %15 = arith.mulf %14, %14 : vector<16x32xf32>
    %cst_11 = arith.constant dense<0.000000e+00> : vector<16xf32>
    %16 = vector.multi_reduction <add>, %15, %cst_11 [1] : vector<16x32xf32> to vector<16xf32>
    %17 = vector.shape_cast %16 : vector<16xf32> to vector<16x1xf32>
    %cst_12 = arith.constant 3.200000e+01 : f32
    %18 = vector.broadcast %cst_12 : f32 to vector<16x1xf32>
    %19 = arith.divf %17, %18 : vector<16x1xf32>
    %cst_13 = arith.constant 9.99999974E-6 : f32
    %20 = vector.broadcast %cst_13 : f32 to vector<16x1xf32>
    %21 = arith.addf %19, %20 : vector<16x1xf32>
    %22 = math.rsqrt %21 : vector<16x1xf32>
    %23 = vector.broadcast %22 : vector<16x1xf32> to vector<16x32xf32>
    %24 = arith.mulf %14, %23 : vector<16x32xf32>
    %25 = vector.extract_strided_slice %6 {offsets = [0, 0], sizes = [1, 32], strides = [1, 1]} : vector<1x64xf32> to vector<1x32xf32>
    %26 = vector.broadcast %25 : vector<1x32xf32> to vector<16x32xf32>
    %27 = arith.mulf %24, %26 : vector<16x32xf32>
    %28 = vector.extract_strided_slice %7 {offsets = [0, 0], sizes = [1, 32], strides = [1, 1]} : vector<1x64xf32> to vector<1x32xf32>
    %29 = vector.broadcast %28 : vector<1x32xf32> to vector<16x32xf32>
    %30 = arith.addf %27, %29 : vector<16x32xf32>
    %cst_14 = arith.constant 0.000000e+00 : f32
    %31 = vector.broadcast %cst_14 : f32 to vector<16x32xf32>
    %32 = arith.maximumf %30, %31 : vector<16x32xf32>
    %33 = vector.extract_strided_slice %5 {offsets = [0, 32], sizes = [16, 32], strides = [1, 1]} : vector<16x64xf32> to vector<16x32xf32>
    %cst_15 = arith.constant dense<0.000000e+00> : vector<16xf32>
    %34 = vector.multi_reduction <add>, %33, %cst_15 [1] : vector<16x32xf32> to vector<16xf32>
    %35 = vector.shape_cast %34 : vector<16xf32> to vector<16x1xf32>
    %cst_16 = arith.constant 3.200000e+01 : f32
    %36 = vector.broadcast %cst_16 : f32 to vector<16x1xf32>
    %37 = arith.divf %35, %36 : vector<16x1xf32>
    %38 = vector.broadcast %37 : vector<16x1xf32> to vector<16x32xf32>
    %39 = arith.subf %33, %38 : vector<16x32xf32>
    %40 = arith.mulf %39, %39 : vector<16x32xf32>
    %cst_17 = arith.constant dense<0.000000e+00> : vector<16xf32>
    %41 = vector.multi_reduction <add>, %40, %cst_17 [1] : vector<16x32xf32> to vector<16xf32>
    %42 = vector.shape_cast %41 : vector<16xf32> to vector<16x1xf32>
    %cst_18 = arith.constant 3.200000e+01 : f32
    %43 = vector.broadcast %cst_18 : f32 to vector<16x1xf32>
    %44 = arith.divf %42, %43 : vector<16x1xf32>
    %cst_19 = arith.constant 9.99999974E-6 : f32
    %45 = vector.broadcast %cst_19 : f32 to vector<16x1xf32>
    %46 = arith.addf %44, %45 : vector<16x1xf32>
    %47 = math.rsqrt %46 : vector<16x1xf32>
    %48 = vector.broadcast %47 : vector<16x1xf32> to vector<16x32xf32>
    %49 = arith.mulf %39, %48 : vector<16x32xf32>
    %50 = vector.extract_strided_slice %6 {offsets = [0, 32], sizes = [1, 32], strides = [1, 1]} : vector<1x64xf32> to vector<1x32xf32>
    %51 = vector.broadcast %50 : vector<1x32xf32> to vector<16x32xf32>
    %52 = arith.mulf %49, %51 : vector<16x32xf32>
    %53 = vector.extract_strided_slice %7 {offsets = [0, 32], sizes = [1, 32], strides = [1, 1]} : vector<1x64xf32> to vector<1x32xf32>
    %54 = vector.broadcast %53 : vector<1x32xf32> to vector<16x32xf32>
    %55 = arith.addf %52, %54 : vector<16x32xf32>
    %cst_20 = arith.constant 0.000000e+00 : f32
    %56 = vector.broadcast %cst_20 : f32 to vector<16x32xf32>
    %57 = arith.maximumf %55, %56 : vector<16x32xf32>
    %c0_21 = arith.constant 0 : index
    %c0_22 = arith.constant 0 : index
    %58 = vector.load %arg13[%c0_21, %c0_22] : memref<32x16xf32, #tpu.memory_space<vmem>>, vector<32x16xf32>
    %cst_23 = arith.constant dense<0.000000e+00> : vector<16x16xf32>
    %59 = tpu.matmul %32, %58, %cst_23 {dimension_numbers = #tpu.dot_dimension_numbers<[1], [0], [0], [1], [0, 0, 1, 1], [], []>, precision = #tpu.contract_precision<fp32>} : vector<16x32xf32>, vector<32x16xf32>, vector<16x16xf32> -> vector<16x16xf32>
    %c0_24 = arith.constant 0 : index
    %c0_25 = arith.constant 0 : index
    %60 = vector.load %arg14[%c0_24, %c0_25] : memref<1x16xf32, #tpu.memory_space<vmem>>, vector<1x16xf32>
    %61 = vector.broadcast %60 : vector<1x16xf32> to vector<16x16xf32>
    %62 = arith.addf %59, %61 : vector<16x16xf32>
    %c0_26 = arith.constant 0 : index
    %c0_27 = arith.constant 0 : index
    %63 = vector.load %arg15[%c0_26, %c0_27] : memref<32x16xf32, #tpu.memory_space<vmem>>, vector<32x16xf32>
    %cst_28 = arith.constant dense<0.000000e+00> : vector<16x16xf32>
    %64 = tpu.matmul %57, %63, %cst_28 {dimension_numbers = #tpu.dot_dimension_numbers<[1], [0], [0], [1], [0, 0, 1, 1], [], []>, precision = #tpu.contract_precision<fp32>} : vector<16x32xf32>, vector<32x16xf32>, vector<16x16xf32> -> vector<16x16xf32>
    %c0_29 = arith.constant 0 : index
    %c0_30 = arith.constant 0 : index
    %65 = vector.load %arg16[%c0_29, %c0_30] : memref<1x16xf32, #tpu.memory_space<vmem>>, vector<1x16xf32>
    %66 = vector.broadcast %65 : vector<1x16xf32> to vector<16x16xf32>
    %67 = arith.addf %64, %66 : vector<16x16xf32>
    %68 = tpu.iota {dimensions = array<i32: 1>} : vector<32x16xi32>
    %c0_31 = arith.constant 0 : index
    %c0_32 = arith.constant 0 : index
    %69 = vector.load %arg3[%c0_31, %c0_32] : memref<32x1xi32, #tpu.memory_space<vmem>>, vector<32x1xi32>
    %70 = vector.broadcast %69 : vector<32x1xi32> to vector<32x16xi32>
    %71 = arith.cmpi eq, %68, %70 : vector<32x16xi32>
    %72 = arith.extui %71 : vector<32x16xi1> to vector<32x16xi32>
    %73 = arith.sitofp %72 : vector<32x16xi32> to vector<32x16xf32>
    %c0_33 = arith.constant 0 : index
    %c0_34 = arith.constant 0 : index
    %74 = vector.load %arg4[%c0_33, %c0_34] : memref<32x1xi32, #tpu.memory_space<vmem>>, vector<32x1xi32>
    %75 = vector.broadcast %74 : vector<32x1xi32> to vector<32x16xi32>
    %76 = arith.cmpi eq, %68, %75 : vector<32x16xi32>
    %77 = arith.extui %76 : vector<32x16xi1> to vector<32x16xi32>
    %78 = arith.sitofp %77 : vector<32x16xi32> to vector<32x16xf32>
    %cst_35 = arith.constant dense<0.000000e+00> : vector<32x16xf32>
    %79 = tpu.matmul %73, %62, %cst_35 {dimension_numbers = #tpu.dot_dimension_numbers<[1], [0], [0], [1], [0, 0, 1, 1], [], []>, precision = #tpu.contract_precision<fp32>} : vector<32x16xf32>, vector<16x16xf32>, vector<32x16xf32> -> vector<32x16xf32>
    %cst_36 = arith.constant dense<0.000000e+00> : vector<32x16xf32>
    %80 = tpu.matmul %78, %67, %cst_36 {dimension_numbers = #tpu.dot_dimension_numbers<[1], [0], [0], [1], [0, 0, 1, 1], [], []>, precision = #tpu.contract_precision<fp32>} : vector<32x16xf32>, vector<16x16xf32>, vector<32x16xf32> -> vector<32x16xf32>
    %81 = arith.mulf %79, %80 : vector<32x16xf32>
    %c0_37 = arith.constant 0 : index
    %c0_38 = arith.constant 0 : index
    %82 = vector.load %arg2[%c0_37, %c0_38] : memref<32x16xf32, #tpu.memory_space<vmem>>, vector<32x16xf32>
    %c0_39 = arith.constant 0 : index
    %c0_40 = arith.constant 0 : index
    %83 = vector.load %arg17[%c0_39, %c0_40] : memref<16x32xf32, #tpu.memory_space<vmem>>, vector<16x32xf32>
    %cst_41 = arith.constant dense<0.000000e+00> : vector<32x32xf32>
    %84 = tpu.matmul %82, %83, %cst_41 {dimension_numbers = #tpu.dot_dimension_numbers<[1], [0], [0], [1], [0, 0, 1, 1], [], []>, precision = #tpu.contract_precision<fp32>} : vector<32x16xf32>, vector<16x32xf32>, vector<32x32xf32> -> vector<32x32xf32>
    %c0_42 = arith.constant 0 : index
    %c0_43 = arith.constant 0 : index
    %85 = vector.load %arg18[%c0_42, %c0_43] : memref<16x32xf32, #tpu.memory_space<vmem>>, vector<16x32xf32>
    %cst_44 = arith.constant dense<0.000000e+00> : vector<32x32xf32>
    %86 = tpu.matmul %81, %85, %cst_44 {dimension_numbers = #tpu.dot_dimension_numbers<[1], [0], [0], [1], [0, 0, 1, 1], [], []>, precision = #tpu.contract_precision<fp32>} : vector<32x16xf32>, vector<16x32xf32>, vector<32x32xf32> -> vector<32x32xf32>
    %87 = arith.mulf %84, %86 : vector<32x32xf32>
    %c0_45 = arith.constant 0 : index
    %c0_46 = arith.constant 0 : index
    %88 = vector.load %arg19[%c0_45, %c0_46] : memref<32x32xf32, #tpu.memory_space<vmem>>, vector<32x32xf32>
    %cst_47 = arith.constant dense<0.000000e+00> : vector<32x32xf32>
    %89 = tpu.matmul %87, %88, %cst_47 {dimension_numbers = #tpu.dot_dimension_numbers<[1], [0], [0], [1], [0, 0, 1, 1], [], []>, precision = #tpu.contract_precision<fp32>} : vector<32x32xf32>, vector<32x32xf32>, vector<32x32xf32> -> vector<32x32xf32>
    %c0_48 = arith.constant 0 : index
    %c0_49 = arith.constant 0 : index
    %90 = vector.load %arg20[%c0_48, %c0_49] : memref<1x32xf32, #tpu.memory_space<vmem>>, vector<1x32xf32>
    %91 = vector.broadcast %90 : vector<1x32xf32> to vector<32x32xf32>
    %92 = arith.addf %89, %91 : vector<32x32xf32>
    %cst_50 = arith.constant dense<0.000000e+00> : vector<32xf32>
    %93 = vector.multi_reduction <add>, %92, %cst_50 [1] : vector<32x32xf32> to vector<32xf32>
    %94 = vector.shape_cast %93 : vector<32xf32> to vector<32x1xf32>
    %cst_51 = arith.constant 3.200000e+01 : f32
    %95 = vector.broadcast %cst_51 : f32 to vector<32x1xf32>
    %96 = arith.divf %94, %95 : vector<32x1xf32>
    %97 = vector.broadcast %96 : vector<32x1xf32> to vector<32x32xf32>
    %98 = arith.subf %92, %97 : vector<32x32xf32>
    %99 = arith.mulf %98, %98 : vector<32x32xf32>
    %cst_52 = arith.constant dense<0.000000e+00> : vector<32xf32>
    %100 = vector.multi_reduction <add>, %99, %cst_52 [1] : vector<32x32xf32> to vector<32xf32>
    %101 = vector.shape_cast %100 : vector<32xf32> to vector<32x1xf32>
    %cst_53 = arith.constant 3.200000e+01 : f32
    %102 = vector.broadcast %cst_53 : f32 to vector<32x1xf32>
    %103 = arith.divf %101, %102 : vector<32x1xf32>
    %cst_54 = arith.constant 9.99999974E-6 : f32
    %104 = vector.broadcast %cst_54 : f32 to vector<32x1xf32>
    %105 = arith.addf %103, %104 : vector<32x1xf32>
    %106 = math.rsqrt %105 : vector<32x1xf32>
    %107 = vector.broadcast %106 : vector<32x1xf32> to vector<32x32xf32>
    %108 = arith.mulf %98, %107 : vector<32x32xf32>
    %c0_55 = arith.constant 0 : index
    %c0_56 = arith.constant 0 : index
    %109 = vector.load %arg21[%c0_55, %c0_56] : memref<1x32xf32, #tpu.memory_space<vmem>>, vector<1x32xf32>
    %110 = vector.broadcast %109 : vector<1x32xf32> to vector<32x32xf32>
    %111 = arith.mulf %108, %110 : vector<32x32xf32>
    %c0_57 = arith.constant 0 : index
    %c0_58 = arith.constant 0 : index
    %112 = vector.load %arg22[%c0_57, %c0_58] : memref<1x32xf32, #tpu.memory_space<vmem>>, vector<1x32xf32>
    %113 = vector.broadcast %112 : vector<1x32xf32> to vector<32x32xf32>
    %114 = arith.addf %111, %113 : vector<32x32xf32>
    %cst_59 = arith.constant 0.000000e+00 : f32
    %115 = vector.broadcast %cst_59 : f32 to vector<32x32xf32>
    %116 = arith.maximumf %114, %115 : vector<32x32xf32>
    %c0_60 = arith.constant 0 : index
    %c0_61 = arith.constant 0 : index
    %117 = vector.load %arg23[%c0_60, %c0_61] : memref<1x32xf32, #tpu.memory_space<vmem>>, vector<1x32xf32>
    %118 = vector.broadcast %117 : vector<1x32xf32> to vector<32x32xf32>
    %119 = arith.mulf %116, %118 : vector<32x32xf32>
    %cst_62 = arith.constant dense<0.000000e+00> : vector<32xf32>
    %120 = vector.multi_reduction <add>, %119, %cst_62 [1] : vector<32x32xf32> to vector<32xf32>
    %121 = vector.shape_cast %120 : vector<32xf32> to vector<32x1xf32>
    %c0_63 = arith.constant 0 : index
    %c0_64 = arith.constant 0 : index
    %122 = vector.load %arg24[%c0_63, %c0_64] : memref<1x1xf32, #tpu.memory_space<vmem>>, vector<1x1xf32>
    %123 = vector.broadcast %122 : vector<1x1xf32> to vector<32x1xf32>
    %124 = arith.addf %121, %123 : vector<32x1xf32>
    %c0_65 = arith.constant 0 : index
    %c0_66 = arith.constant 0 : index
    %125 = vector.load %arg25[%c0_65, %c0_66] : memref<16x32xf32, #tpu.memory_space<vmem>>, vector<16x32xf32>
    %cst_67 = arith.constant dense<0.000000e+00> : vector<32x32xf32>
    %126 = tpu.matmul %82, %125, %cst_67 {dimension_numbers = #tpu.dot_dimension_numbers<[1], [0], [0], [1], [0, 0, 1, 1], [], []>, precision = #tpu.contract_precision<fp32>} : vector<32x16xf32>, vector<16x32xf32>, vector<32x32xf32> -> vector<32x32xf32>
    %c0_68 = arith.constant 0 : index
    %c0_69 = arith.constant 0 : index
    %127 = vector.load %arg26[%c0_68, %c0_69] : memref<16x32xf32, #tpu.memory_space<vmem>>, vector<16x32xf32>
    %cst_70 = arith.constant dense<0.000000e+00> : vector<32x32xf32>
    %128 = tpu.matmul %81, %127, %cst_70 {dimension_numbers = #tpu.dot_dimension_numbers<[1], [0], [0], [1], [0, 0, 1, 1], [], []>, precision = #tpu.contract_precision<fp32>} : vector<32x16xf32>, vector<16x32xf32>, vector<32x32xf32> -> vector<32x32xf32>
    %129 = arith.addf %126, %128 : vector<32x32xf32>
    %c0_71 = arith.constant 0 : index
    %c0_72 = arith.constant 0 : index
    %130 = vector.load %arg8[%c0_71, %c0_72] : memref<32x1xf32, #tpu.memory_space<vmem>>, vector<32x1xf32>
    %c0_73 = arith.constant 0 : index
    %c0_74 = arith.constant 0 : index
    %131 = vector.load %arg27[%c0_73, %c0_74] : memref<1x32xf32, #tpu.memory_space<vmem>>, vector<1x32xf32>
    %132 = vector.broadcast %130 : vector<32x1xf32> to vector<32x32xf32>
    %133 = vector.broadcast %131 : vector<1x32xf32> to vector<32x32xf32>
    %134 = arith.mulf %132, %133 : vector<32x32xf32>
    %135 = arith.addf %129, %134 : vector<32x32xf32>
    %c0_75 = arith.constant 0 : index
    %c0_76 = arith.constant 0 : index
    %136 = vector.load %arg28[%c0_75, %c0_76] : memref<1x32xf32, #tpu.memory_space<vmem>>, vector<1x32xf32>
    %137 = vector.broadcast %136 : vector<1x32xf32> to vector<32x32xf32>
    %138 = arith.addf %135, %137 : vector<32x32xf32>
    %cst_77 = arith.constant dense<0.000000e+00> : vector<32xf32>
    %139 = vector.multi_reduction <add>, %138, %cst_77 [1] : vector<32x32xf32> to vector<32xf32>
    %140 = vector.shape_cast %139 : vector<32xf32> to vector<32x1xf32>
    %cst_78 = arith.constant 3.200000e+01 : f32
    %141 = vector.broadcast %cst_78 : f32 to vector<32x1xf32>
    %142 = arith.divf %140, %141 : vector<32x1xf32>
    %143 = vector.broadcast %142 : vector<32x1xf32> to vector<32x32xf32>
    %144 = arith.subf %138, %143 : vector<32x32xf32>
    %145 = arith.mulf %144, %144 : vector<32x32xf32>
    %cst_79 = arith.constant dense<0.000000e+00> : vector<32xf32>
    %146 = vector.multi_reduction <add>, %145, %cst_79 [1] : vector<32x32xf32> to vector<32xf32>
    %147 = vector.shape_cast %146 : vector<32xf32> to vector<32x1xf32>
    %cst_80 = arith.constant 3.200000e+01 : f32
    %148 = vector.broadcast %cst_80 : f32 to vector<32x1xf32>
    %149 = arith.divf %147, %148 : vector<32x1xf32>
    %cst_81 = arith.constant 9.99999974E-6 : f32
    %150 = vector.broadcast %cst_81 : f32 to vector<32x1xf32>
    %151 = arith.addf %149, %150 : vector<32x1xf32>
    %152 = math.rsqrt %151 : vector<32x1xf32>
    %153 = vector.broadcast %152 : vector<32x1xf32> to vector<32x32xf32>
    %154 = arith.mulf %144, %153 : vector<32x32xf32>
    %c0_82 = arith.constant 0 : index
    %c0_83 = arith.constant 0 : index
    %155 = vector.load %arg29[%c0_82, %c0_83] : memref<1x32xf32, #tpu.memory_space<vmem>>, vector<1x32xf32>
    %156 = vector.broadcast %155 : vector<1x32xf32> to vector<32x32xf32>
    %157 = arith.mulf %154, %156 : vector<32x32xf32>
    %c0_84 = arith.constant 0 : index
    %c0_85 = arith.constant 0 : index
    %158 = vector.load %arg30[%c0_84, %c0_85] : memref<1x32xf32, #tpu.memory_space<vmem>>, vector<1x32xf32>
    %159 = vector.broadcast %158 : vector<1x32xf32> to vector<32x32xf32>
    %160 = arith.addf %157, %159 : vector<32x32xf32>
    %cst_86 = arith.constant 0.000000e+00 : f32
    %161 = vector.broadcast %cst_86 : f32 to vector<32x32xf32>
    %162 = arith.maximumf %160, %161 : vector<32x32xf32>
    %c0_87 = arith.constant 0 : index
    %c0_88 = arith.constant 0 : index
    %163 = vector.load %arg31[%c0_87, %c0_88] : memref<1x32xf32, #tpu.memory_space<vmem>>, vector<1x32xf32>
    %164 = vector.broadcast %163 : vector<1x32xf32> to vector<32x32xf32>
    %165 = arith.mulf %162, %164 : vector<32x32xf32>
    %cst_89 = arith.constant dense<0.000000e+00> : vector<32xf32>
    %166 = vector.multi_reduction <add>, %165, %cst_89 [1] : vector<32x32xf32> to vector<32xf32>
    %167 = vector.shape_cast %166 : vector<32xf32> to vector<32x1xf32>
    %c0_90 = arith.constant 0 : index
    %c0_91 = arith.constant 0 : index
    %168 = vector.load %arg32[%c0_90, %c0_91] : memref<1x1xf32, #tpu.memory_space<vmem>>, vector<1x1xf32>
    %169 = vector.broadcast %168 : vector<1x1xf32> to vector<32x1xf32>
    %170 = arith.addf %167, %169 : vector<32x1xf32>
    %171 = arith.negf %170 : vector<32x1xf32>
    %172 = math.exp %171 : vector<32x1xf32>
    %cst_92 = arith.constant 1.000000e+00 : f32
    %173 = vector.broadcast %cst_92 : f32 to vector<32x1xf32>
    %174 = arith.addf %173, %172 : vector<32x1xf32>
    %175 = arith.divf %173, %174 : vector<32x1xf32>
    %176 = arith.mulf %124, %175 : vector<32x1xf32>
    %c0_93 = arith.constant 0 : index
    %c0_94 = arith.constant 0 : index
    %177 = vector.load %arg7[%c0_93, %c0_94] : memref<32x1xf32, #tpu.memory_space<vmem>>, vector<32x1xf32>
    %178 = arith.mulf %177, %177 : vector<32x1xf32>
    %179 = arith.addf %178, %177 : vector<32x1xf32>
    %180 = tpu.reciprocal %179 {approx = true} : vector<32x1xf32> -> vector<32x1xf32>
    %c0_95 = arith.constant 0 : index
    %c0_96 = arith.constant 0 : index
    %181 = vector.load %arg6[%c0_95, %c0_96] : memref<32x3xf32, #tpu.memory_space<vmem>>, vector<32x3xf32>
    %182 = vector.broadcast %176 : vector<32x1xf32> to vector<32x3xf32>
    %183 = arith.mulf %182, %181 : vector<32x3xf32>
    %184 = vector.broadcast %180 : vector<32x1xf32> to vector<32x3xf32>
    %185 = arith.mulf %183, %184 : vector<32x3xf32>
    %186 = tpu.iota {dimensions = array<i32: 0>} : vector<16x32xi32>
    %c0_97 = arith.constant 0 : index
    %c0_98 = arith.constant 0 : index
    %187 = vector.load %arg5[%c0_97, %c0_98] : memref<1x32xi32, #tpu.memory_space<vmem>>, vector<1x32xi32>
    %188 = vector.broadcast %187 : vector<1x32xi32> to vector<16x32xi32>
    %189 = arith.cmpi eq, %186, %188 : vector<16x32xi32>
    %190 = arith.extui %189 : vector<16x32xi1> to vector<16x32xi32>
    %191 = arith.sitofp %190 : vector<16x32xi32> to vector<16x32xf32>
    %cst_99 = arith.constant dense<0.000000e+00> : vector<16x3xf32>
    %192 = tpu.matmul %191, %185, %cst_99 {dimension_numbers = #tpu.dot_dimension_numbers<[1], [0], [0], [1], [0, 0, 1, 1], [], []>, precision = #tpu.contract_precision<fp32>} : vector<16x32xf32>, vector<32x3xf32>, vector<16x3xf32> -> vector<16x3xf32>
    %c0_100 = arith.constant 0 : index
    %c0_101 = arith.constant 0 : index
    %193 = vector.load %arg33[%c0_100, %c0_101] : memref<16x3xf32, #tpu.memory_space<vmem>>, vector<16x3xf32>
    tpu.vector_store %arg33[%c0_100, %c0_101], %192 {strides = array<i32>} : memref<16x3xf32, #tpu.memory_space<vmem>>, vector<16x3xf32>,
    return
  }
  func.func @transform_0(%arg0: i32) -> (i32, i32) {
    %c0_i32 = arith.constant 0 : i32
    %c0_i32_0 = arith.constant 0 : i32
    %c0_i32_1 = arith.constant 0 : i32
    return %c0_i32, %c0_i32_0 : i32, i32
  }
  func.func @transform_1(%arg0: i32) -> (i32, i32) {
    %c0_i32 = arith.constant 0 : i32
    %c0_i32_0 = arith.constant 0 : i32
    %c0_i32_1 = arith.constant 0 : i32
    return %c0_i32, %c0_i32_0 : i32, i32
  }
  func.func @transform_2(%arg0: i32) -> (i32, i32) {
    %c0_i32 = arith.constant 0 : i32
    %c0_i32_0 = arith.constant 0 : i32
    %c0_i32_1 = arith.constant 0 : i32
    return %c0_i32, %c0_i32_0 : i32, i32
  }
  func.func @transform_3(%arg0: i32) -> (i32, i32) {
    %c0_i32 = arith.constant 0 : i32
    %c0_i32_0 = arith.constant 0 : i32
    %c0_i32_1 = arith.constant 0 : i32
    return %c0_i32, %c0_i32_0 : i32, i32
  }
  func.func @transform_4(%arg0: i32) -> (i32, i32) {
    %c0_i32 = arith.constant 0 : i32
    %c0_i32_0 = arith.constant 0 : i32
    %c0_i32_1 = arith.constant 0 : i32
    return %c0_i32, %c0_i32_0 : i32, i32
  }
  func.func @transform_5(%arg0: i32) -> (i32, i32) {
    %c0_i32 = arith.constant 0 : i32
    %c0_i32_0 = arith.constant 0 : i32
    %c0_i32_1 = arith.constant 0 : i32
    return %c0_i32, %c0_i32_0 : i32, i32
  }
  func.func @transform_6(%arg0: i32) -> (i32, i32) {
    %c0_i32 = arith.constant 0 : i32
    %c0_i32_0 = arith.constant 0 : i32
    %c0_i32_1 = arith.constant 0 : i32
    return %c0_i32, %c0_i32_0 : i32, i32
  }
  func.func @transform_7(%arg0: i32) -> (i32, i32) {
    %c0_i32 = arith.constant 0 : i32
    %c0_i32_0 = arith.constant 0 : i32
    %c0_i32_1 = arith.constant 0 : i32
    return %c0_i32, %c0_i32_0 : i32, i32
  }
  func.func @transform_8(%arg0: i32) -> (i32, i32) {
    %c0_i32 = arith.constant 0 : i32
    %c0_i32_0 = arith.constant 0 : i32
    %c0_i32_1 = arith.constant 0 : i32
    return %c0_i32, %c0_i32_0 : i32, i32
  }
  func.func @transform_9(%arg0: i32) -> (i32, i32) {
    %c0_i32 = arith.constant 0 : i32
    %c0_i32_0 = arith.constant 0 : i32
    %c0_i32_1 = arith.constant 0 : i32
    return %c0_i32, %c0_i32_0 : i32, i32
  }
  func.func @transform_10(%arg0: i32) -> (i32, i32) {
    %c0_i32 = arith.constant 0 : i32
    %c0_i32_0 = arith.constant 0 : i32
    %c0_i32_1 = arith.constant 0 : i32
    return %c0_i32, %c0_i32_0 : i32, i32
  }
  func.func @transform_11(%arg0: i32) -> (i32, i32) {
    %c0_i32 = arith.constant 0 : i32
    %c0_i32_0 = arith.constant 0 : i32
    %c0_i32_1 = arith.constant 0 : i32
    return %c0_i32, %c0_i32_0 : i32, i32
  }
  func.func @transform_12(%arg0: i32) -> (i32, i32) {
    %c0_i32 = arith.constant 0 : i32
    %c0_i32_0 = arith.constant 0 : i32
    %c0_i32_1 = arith.constant 0 : i32
    return %c0_i32, %c0_i32_0 : i32, i32
  }
  func.func @transform_13(%arg0: i32) -> (i32, i32) {
    %c0_i32 = arith.constant 0 : i32
    %c0_i32_0 = arith.constant 0 : i32
    %c0_i32_1 = arith.constant 0 : i32
    return %c0_i32, %c0_i32_0 : i32, i32
  }
  func.func @transform_14(%arg0: i32) -> (i32, i32) {
    %c0_i32 = arith.constant 0 : i32
    %c0_i32_0 = arith.constant 0 : i32
    %c0_i32_1 = arith.constant 0 : i32
    return %c0_i32, %c0_i32_0 : i32, i32
  }
  func.func @transform_15(%arg0: i32) -> (i32, i32) {
    %c0_i32 = arith.constant 0 : i32
    %c0_i32_0 = arith.constant 0 : i32
    %c0_i32_1 = arith.constant 0 : i32
    return %c0_i32, %c0_i32_0 : i32, i32
  }
  func.func @transform_16(%arg0: i32) -> (i32, i32) {
    %c0_i32 = arith.constant 0 : i32
    %c0_i32_0 = arith.constant 0 : i32
    %c0_i32_1 = arith.constant 0 : i32
    return %c0_i32, %c0_i32_0 : i32, i32
  }
  func.func @transform_17(%arg0: i32) -> (i32, i32) {
    %c0_i32 = arith.constant 0 : i32
    %c0_i32_0 = arith.constant 0 : i32
    %c0_i32_1 = arith.constant 0 : i32
    return %c0_i32, %c0_i32_0 : i32, i32
  }
  func.func @transform_18(%arg0: i32) -> (i32, i32) {
    %c0_i32 = arith.constant 0 : i32
    %c0_i32_0 = arith.constant 0 : i32
    %c0_i32_1 = arith.constant 0 : i32
    return %c0_i32, %c0_i32_0 : i32, i32
  }
  func.func @transform_19(%arg0: i32) -> (i32, i32) {
    %c0_i32 = arith.constant 0 : i32
    %c0_i32_0 = arith.constant 0 : i32
    %c0_i32_1 = arith.constant 0 : i32
    return %c0_i32, %c0_i32_0 : i32, i32
  }
  func.func @transform_20(%arg0: i32) -> (i32, i32) {
    %c0_i32 = arith.constant 0 : i32
    %c0_i32_0 = arith.constant 0 : i32
    %c0_i32_1 = arith.constant 0 : i32
    return %c0_i32, %c0_i32_0 : i32, i32
  }
  func.func @transform_21(%arg0: i32) -> (i32, i32) {
    %c0_i32 = arith.constant 0 : i32
    %c0_i32_0 = arith.constant 0 : i32
    %c0_i32_1 = arith.constant 0 : i32
    return %c0_i32, %c0_i32_0 : i32, i32
  }
  func.func @transform_22(%arg0: i32) -> (i32, i32) {
    %c0_i32 = arith.constant 0 : i32
    %c0_i32_0 = arith.constant 0 : i32
    %c0_i32_1 = arith.constant 0 : i32
    return %c0_i32, %c0_i32_0 : i32, i32
  }
  func.func @transform_23(%arg0: i32) -> (i32, i32) {
    %c0_i32 = arith.constant 0 : i32
    %c0_i32_0 = arith.constant 0 : i32
    %c0_i32_1 = arith.constant 0 : i32
    return %c0_i32, %c0_i32_0 : i32, i32
  }
  func.func @transform_24(%arg0: i32) -> (i32, i32) {
    %c0_i32 = arith.constant 0 : i32
    %c0_i32_0 = arith.constant 0 : i32
    %c0_i32_1 = arith.constant 0 : i32
    return %c0_i32, %c0_i32_0 : i32, i32
  }
  func.func @transform_25(%arg0: i32) -> (i32, i32) {
    %c0_i32 = arith.constant 0 : i32
    %c0_i32_0 = arith.constant 0 : i32
    %c0_i32_1 = arith.constant 0 : i32
    return %c0_i32, %c0_i32_0 : i32, i32
  }
  func.func @transform_26(%arg0: i32) -> (i32, i32) {
    %c0_i32 = arith.constant 0 : i32
    %c0_i32_0 = arith.constant 0 : i32
    %c0_i32_1 = arith.constant 0 : i32
    return %c0_i32, %c0_i32_0 : i32, i32
  }
  func.func @transform_27(%arg0: i32) -> (i32, i32) {
    %c0_i32 = arith.constant 0 : i32
    %c0_i32_0 = arith.constant 0 : i32
    %c0_i32_1 = arith.constant 0 : i32
    return %c0_i32, %c0_i32_0 : i32, i32
  }
  func.func @transform_28(%arg0: i32) -> (i32, i32) {
    %c0_i32 = arith.constant 0 : i32
    %c0_i32_0 = arith.constant 0 : i32
    %c0_i32_1 = arith.constant 0 : i32
    return %c0_i32, %c0_i32_0 : i32, i32
  }
  func.func @transform_29(%arg0: i32) -> (i32, i32) {
    %c0_i32 = arith.constant 0 : i32
    %c0_i32_0 = arith.constant 0 : i32
    %c0_i32_1 = arith.constant 0 : i32
    return %c0_i32, %c0_i32_0 : i32, i32
  }
  func.func @transform_30(%arg0: i32) -> (i32, i32) {
    %c0_i32 = arith.constant 0 : i32
    %c0_i32_0 = arith.constant 0 : i32
    %c0_i32_1 = arith.constant 0 : i32
    return %c0_i32, %c0_i32_0 : i32, i32
  }
  func.func @transform_31(%arg0: i32) -> (i32, i32) {
    %c0_i32 = arith.constant 0 : i32
    %c0_i32_0 = arith.constant 0 : i32
    %c0_i32_1 = arith.constant 0 : i32
    return %c0_i32, %c0_i32_0 : i32, i32
  }
  func.func @transform_32(%arg0: i32) -> (i32, i32) {
    %c0_i32 = arith.constant 0 : i32
    %c0_i32_0 = arith.constant 0 : i32
    %c0_i32_1 = arith.constant 0 : i32
    return %c0_i32, %c0_i32_0 : i32, i32
  }
}

</mosaic_0001>

<bundles_post_ra>
// kernel: pos_update_forward.1
= control target key start
LH: loop header
LB: loop body
LE: loop exit
PB: predicated region body
PF: predicated region fallthrough
CT: control target
= control target key end

     0   :  { %s8964_s3 = smov 8   ;;  %vm151_vm0 = vcmask 261120   ;;  %s8965_s10 = smov 9   ;;  %vm1933_vm2 = vcmask 130048   ;;  %vm7085_vm12 = vcmask 23552   ;;  %s9725_s0 = inlined_call_operand.smem [shape: u32[33], index: -1, kind: input, shape index: {}] }
   0x1   :  { %s7099_s6 = sld [smem:[%s9725_s0 + %s8964_s3]]   ;;  %s8966_s14 = smov 96  }
   0x2   :  { %s1_s9 = sld [smem:[%s9725_s0]]   ;;  %s8967_s15 = smov 12  }
   0x3   :  { %s7100_s13 = sld [smem:[%s9725_s0 + %s8965_s10]]   ;;  %s8968_s19 = smov 10  }
   0x4   :  { %s7103_s18 = sld [smem:[%s9725_s0 + %s8967_s15]]   ;;  %s8969_s23 = smov 14  }
   0x5   :  { %s7101_s22 = sld [smem:[%s9725_s0 + %s8968_s19]]   ;;  %s8970_s27 = smov 11  }
   0x6   :  { %s7105_s26 = sld [smem:[%s9725_s0 + %s8969_s23]]   ;;  %s8972_s1 = smov 3  }
   0x7   :  { %v140_v0 = vld [vmem:[%s7099_s6] sm:$0xff]  ;;  %v141_v1 = vld [vmem:[%s7099_s6 + $0x8] sm:$0xff]  ;;  %v142_v2 = vld [vmem:[%s7099_s6 + $0x10] sm:$0xff]  ;;  %s7102_s30 = sld [smem:[%s9725_s0 + %s8970_s27]]   ;;  %s8973_s5 = smov 2  }
   0x8   :  { %v159_v3 = vand.u32 4294901760, %v140_v0  ;;  %v162_v4 = vand.u32 4294901760, %v141_v1  ;;  %v143_v5 = vld [vmem:[%s7099_s6 + $0x18] sm:$0xff]  ;;  %v165_v6 = vand.u32 4294901760, %v142_v2  ;;  %v138_v7 = vld [vmem:[%s1_s9] sm:$0xff]  ;;  %v139_v8 = vld [vmem:[%s1_s9 + $0x8] sm:$0xff]  ;;  %s9124_s4 = sld [smem:[%s9725_s0 + %s8972_s1]]  }
   0x9   :  { %v168_v9 = vand.u32 4294901760, %v143_v5  ;;  %v153_v10 = vsel %vm151_vm0, %v138_v7, 0  ;;  %v156_v11 = vsel %vm151_vm0, %v139_v8, 0  ;;  %v7124_v46 = vld [vmem:[%s7100_s13] ss:$0 sm:$0xff]  ;;  %s7093_s8 = sld [smem:[%s9725_s0 + %s8973_s5]]   ;;  %s8974_s9 = smov 7  }
   0xa   :  { %v8301_v12 = vpack.c.bf16 %v162_v4, %v159_v3  ;;  %v9012_v13 = vand.u32 4294901760, %v153_v10  ;;  %v9014_v14 = vand.u32 4294901760, %v156_v11  ;;  %v249_v15 = vsub.f32 %v140_v0, %v159_v3  ;;  %s9133_s12 = sld [smem:[%s9725_s0 + %s8974_s9]]   ;;  %s8976_s13 = smov 13  }
   0xb   :  { %v8305_v16 = vpack.c.bf16 %v168_v9, %v165_v6  ;;  %v256_v17 = vsub.f32 %v141_v1, %v162_v4  ;;  %v263_v18 = vsub.f32 %v142_v2, %v165_v6  ;;  %v270_v19 = vsub.f32 %v143_v5, %v168_v9  ;;  %s7104_s16 = sld [smem:[%s9725_s0 + %s8976_s13]]   ;;  %s8977_s17 = smov 15  }
   0xc   :  { %8302 = vmatprep.subr.bf16.mxu1 %v8301_v12  ;;  %8326 = vmatprep.subr.bf16.mxu0 %v8301_v12  ;;  %v228_v20 = vsub.f32 %v153_v10, %v9012_v13  ;;  %v238_v21 = vsub.f32 %v156_v11, %v9014_v14  ;;  %v250_v22 = vand.u32 4294901760, %v249_v15  ;;  %s7106_s20 = sld [smem:[%s9725_s0 + %s8977_s17]]   ;;  %s8978_s21 = smov 1  }
   0xd   :  { %8304 = vmatpush3.bf16.msra.mxu1 %v8301_v12  ;;  %8328 = vmatpush3.bf16.msra.mxu0 %v8301_v12  ;;  %v257_v23 = vand.u32 4294901760, %v256_v17  ;;  %v264_v24 = vand.u32 4294901760, %v263_v18  ;;  %v271_v25 = vand.u32 4294901760, %v270_v19  ;;  %v8317_v44 = vpack.c.bf16 %v256_v17, %v249_v15  ;;  %s7092_s24 = sld [smem:[%s9725_s0 + %s8978_s21]]   ;;  %s8979_s25 = smov 16  }
   0xe   :  { %8306 = vmatprep.subr.bf16.mxu1 %v8305_v16  ;;  %8330 = vmatprep.subr.bf16.mxu0 %v8305_v16  ;;  %v229_v26 = vand.u32 4294901760, %v228_v20  ;;  %v239_v27 = vand.u32 4294901760, %v238_v21  ;;  %v251_v28 = vsub.f32 %v249_v15, %v250_v22  ;;  %v8321_v45 = vpack.c.bf16 %v270_v19, %v263_v18  ;;  %s7107_s28 = sld [smem:[%s9725_s0 + %s8979_s25]]   ;;  %s8980_s29 = smov 17  }
   0xf   :  { %v258_v29 = vsub.f32 %v256_v17, %v257_v23  ;;  %v8333_v30 = vpack.c.bf16 %v257_v23, %v250_v22  ;;  %v265_v31 = vsub.f32 %v263_v18, %v264_v24  ;;  %v272_v32 = vsub.f32 %v270_v19, %v271_v25  ;;  %v781_v19 = vld [vmem:[%s7103_s18] sm:$0xff]  ;;  %s7108_s2 = sld [smem:[%s9725_s0 + %s8980_s29]]   ;;  %s8981_s3 = smov 25  }
  0x10   :  { %v230_v33 = vsub.f32 %v228_v20, %v229_v26  ;;  %7634 = vmatprep.mubr.f32.mxu0 %v229_v26  ;;  %v240_v34 = vsub.f32 %v238_v21, %v239_v27  ;;  %v252_v35 = vand.u32 4294901760, %v251_v28  ;;  %v8337_v43 = vpack.c.bf16 %v271_v25, %v264_v24  ;;  %v783_v26 = vld [vmem:[%s7103_s18 + $0x10] sm:$0xff]  ;;  %s7116_s6 = sld [smem:[%s9725_s0 + %s8981_s3]]   ;;  %s8982_s7 = smov 24  }
  0x11   :  { %8308 = vmatpush3.bf16.msra.mxu1 %v8305_v16  ;;  %8332 = vmatpush3.bf16.msra.mxu0 %v8305_v16  ;;  %v259_v36 = vand.u32 4294901760, %v258_v29  ;;  %v266_v37 = vand.u32 4294901760, %v265_v31  ;;  %v273_v38 = vand.u32 4294901760, %v272_v32  ;;  %v805_v28 = vand.u32 4294901760, %v783_v26  ;;  %s7115_s10 = sld [smem:[%s9725_s0 + %s8982_s7]]   ;;  %s8983_s11 = smov 18  }
  0x12   :  { %v231_v39 = vand.u32 4294901760, %v230_v33  ;;  %v241_v40 = vand.u32 4294901760, %v240_v34  ;;  %8334 = vmatprep.subr.bf16.mxu0 %v8333_v30  ;;  %s8984_s15 = smov 26   ;;  %s8985_s19 = smov 27  }
  0x13   :  { %v8309_v41 = vpack.c.bf16 %v259_v36, %v252_v35  ;;  %v8313_v42 = vpack.c.bf16 %v273_v38, %v266_v37  ;;  %v903_v35 = vsub.f32 %v783_v26, %v805_v28  ;;  %s8986_s23 = smov 19   ;;  %s8987_s27 = smov 28  }
  0x14   :  { %7601 = vmatprep.mubr.f32.mxu1 %v231_v39  ;;  %7635 = vmatmul.mubr.f32.vlgmr.msra.gmra.mrb[0].mxu0 %v239_v27  ;;  %v784_v27 = vld [vmem:[%s7103_s18 + $0x18] sm:$0xff]  ;;  %s8988_s1 = smov 29   ;;  %s8989_s5 = smov 30  }
  0x15   :  { %7602 = vmatmul.mubr.f32.vlgmr.msra.gmra.mrb[0].mxu1 %v241_v40  ;;  %8310 = vmatprep.subr.bf16.mxu1 %v8309_v41  ;;  %v808_v29 = vand.u32 4294901760, %v784_v27  ;;  %v904_v39 = vand.u32 4294901760, %v903_v35  ;;  %s8990_s9 = smov 31   ;;  %s8991_s13 = smov 23  }
  0x16   :  { %8312 = vmatpush3.bf16.msra.mxu1 %v8309_v41  ;;  %8336 = vmatpush3.bf16.msra.mxu0 %v8333_v30  ;;  %s8992_s17 = smov 20   ;;  %s8993_s21 = smov 21  }
  0x17   :  { %8314 = vmatprep.subr.bf16.mxu1 %v8313_v42  ;;  %8338 = vmatprep.subr.bf16.mxu0 %v8337_v43  ;;  %v9062_v32 = vpack.c.bf16 %v808_v29, %v805_v28  ;;  %v910_v36 = vsub.f32 %v784_v27, %v808_v29  ;;  %s8994_s25 = smov 22   ;;  %s8995_s29 = smov 6  }
  0x18   :  { %7612 = vmatprep.mubr.f32.mxu1 %v9012_v13  ;;  %7645 = vmatprep.mubr.f32.mxu0 %v9012_v13  ;;  %s8996_s3 = smov 4   ;;  %s8997_s7 = smov 5  }
  0x19   :  { %v911_v40 = vand.u32 4294901760, %v910_v36 }
  0x1a   :  { %8316 = vmatpush3.bf16.msra.mxu1 %v8313_v42  ;;  %8340 = vmatpush3.bf16.msra.mxu0 %v8337_v43  ;;  %v905_v42 = vsub.f32 %v903_v35, %v904_v39 }
  0x1b   :  { %8318 = vmatprep.subr.bf16.mxu1 %v8317_v44  ;;  %8342 = vmatprep.subr.bf16.mxu0 %v8301_v12  ;;  %v912_v43 = vsub.f32 %v910_v36, %v911_v40 }
  0x1d   :  { %7613 = vmatmul.mubr.f32.vlgmr.msra.gmra.mrb[0].mxu1 %v9014_v14  ;;  %7646 = vmatmul.mubr.f32.vlgmr.msra.gmra.mrb[0].mxu0 %v9014_v14 }
  0x1e   :  { %8320 = vmatpush3.bf16.msra.mxu1 %v8317_v44  ;;  %8344 = vmatpush3.bf16.msra.mxu0 %v8301_v12  ;;  %v906_v44 = vand.u32 4294901760, %v905_v42 }
  0x1f   :  { %8322 = vmatprep.subr.bf16.mxu1 %v8321_v45  ;;  %8346 = vmatprep.subr.bf16.mxu0 %v8305_v16 }
  0x20   :  { %7623 = vmatprep.mubr.f32.mxu1 %v228_v20  ;;  %7656 = vmatprep.mubr.f32.mxu0 %v9012_v13  ;;  %v782_v20 = vld [vmem:[%s7103_s18 + $0x8] sm:$0xff]  ;;  %s7117_s18 = sld [smem:[%s9725_s0 + %s8984_s15]]  }
  0x21   :  { %v802_v22 = vand.u32 4294901760, %v782_v20 }
  0x22   :  { %8324 = vmatpush3.bf16.msra.mxu1 %v8321_v45  ;;  %8348 = vmatpush3.bf16.msra.mxu0 %v8305_v16  ;;  %v913_v45 = vand.u32 4294901760, %v912_v43 }
  0x23   :  { %v896_v25 = vsub.f32 %v782_v20, %v802_v22 }
  0x25   :  { %7624 = vmatmul.mubr.f32.vlgmr.msra.gmra.mrb[0].mxu1 %v238_v21  ;;  %7657 = vmatmul.mubr.f32.vlgmr.msra.gmra.mrb[0].mxu0 %v9014_v14  ;;  %v799_v21 = vand.u32 4294901760, %v781_v19  ;;  %v897_v31 = vand.u32 4294901760, %v896_v25 }
  0x27   :  { %v9058_v23 = vpack.c.bf16 %v802_v22, %v799_v21  ;;  %v889_v24 = vsub.f32 %v781_v19, %v799_v21  ;;  %v898_v34 = vsub.f32 %v896_v25, %v897_v31 }
  0x29   :  { %8350 = vmatprep.subr.bf16.mxu1 %v9058_v23  ;;  %v890_v30 = vand.u32 4294901760, %v889_v24  ;;  %v899_v38 = vand.u32 4294901760, %v898_v34 }
  0x2a   :  { %8352 = vmatpush3.bf16.msra.mxu1 %v9058_v23 }
  0x2b   :  { %v891_v33 = vsub.f32 %v889_v24, %v890_v30  ;;  %8354 = vmatprep.subr.bf16.mxu1 %v9062_v32 }
  0x2d   :  { %v892_v37 = vand.u32 4294901760, %v891_v33 }
  0x2e   :  { %8356 = vmatpush3.bf16.msra.mxu1 %v9062_v32 }
  0x2f   :  { %v9066_v41 = vpack.c.bf16 %v899_v38, %v892_v37 }
  0x31   :  { %8358 = vmatprep.subr.bf16.mxu1 %v9066_v41 }
  0xf8   :  { %v7625_v47 = vpop.f32.mrb[0].mxu1  ;;  %v7658_v48 = vpop.f32.mrb[0].mxu0 }
  0xf9   :  { %v8685_v49 = vadd.f32 %v7625_v47, %v7124_v46  ;;  %v420_v50 = vpop.f32.mrb[1].mxu1  ;;  %v676_v51 = vpop.f32.mrb[1].mxu0  ;;  %v9071_v47 = vpack.c.bf16 %v896_v25, %v889_v24 }
  0xfa   :  { %v8687_v52 = vadd.f32 %v7124_v46, %v420_v50  ;;  %v9069_v46 = vpack.c.bf16 %v913_v45, %v906_v44  ;;  %v8971_v45 = vmov 0  }
  0xfb   :  { %v8686_v53 = vadd.f32 %v8685_v49, %v7658_v48  ;;  %v9073_v48 = vpack.c.bf16 %v910_v36, %v903_v35  ;;  %8915 = vset.pattern.permute.xlu0 %v8971_v45  ;;  %8914 = vset.pattern.permute.xlu1 %v8971_v45 }
  0xfc   :  { %v8688_v54 = vadd.f32 %v8687_v52, %v676_v51  ;;  %v9075_v51 = vpack.c.bf16 %v897_v31, %v890_v30 }
  0xfd   :  { %v691_v4 = vsel %vm151_vm0, %v8686_v53, 0.0 }
  0xfe   :  { %735 = vrot.lane.b32.xlu0 %v8688_v54, %s8966_s14  ;;  %v688_v3 = vsel %vm151_vm0, %v8688_v54, 0.0 }
 0x102   :  { %737 = vrot.lane.b32.xlu0 %v8686_v53, %s8966_s14 }
 0x170   :  { %v736_v55 = vpop.permute.xlu0 %735 }
 0x171   :  { %v741_v56 = vsel %vm151_vm0, %v736_v55, 0.0  ;;  %v9077_v55 = vpack.c.bf16 %v911_v40, %v904_v39 }
 0x172   :  { %742 = vadd.xlane.f32.xlu1 %v741_v56 }
 0x174   :  { %v738_v57 = vpop.permute.xlu0 %737 }
 0x175   :  { %v744_v58 = vsel %vm151_vm0, %v738_v57, 0.0  ;;  %v1326_v57 = vld [vmem:[%s7105_s26] sm:$0xff] }
 0x176   :  { %745 = vadd.xlane.f32.xlu1 %v744_v58  ;;  %v1327_v58 = vld [vmem:[%s7105_s26 + $0x8] sm:$0xff] }
 0x1ff   :  { %v743_v59 = vpop.xlane.xlu1 %742 }
 0x200   :  { %v747_v60 = vmul.f32 0.03125, %v743_v59  ;;  %v1348_v59 = vand.u32 4294901760, %v1326_v57 }
 0x202   :  { %v9031_v61 = vsub.f32 %v8688_v54, %v747_v60  ;;  %v1351_v60 = vand.u32 4294901760, %v1327_v58 }
 0x203   :  { %v746_v62 = vpop.xlane.xlu1 %745 }
 0x204   :  { %v748_v63 = vmul.f32 0.03125, %v746_v62  ;;  %v751_v0 = vmul.f32 %v9031_v61, %v9031_v61 }
 0x206   :  { %v9035_v1 = vsub.f32 %v8686_v53, %v748_v63  ;;  %755 = vrot.lane.b32.xlu0 %v751_v0, %s8966_s14  ;;  %v9088_v63 = vld [vmem:[%s7101_s22] ss:$0 sm:$0xff]  ;;  %s7118_s22 = sld [smem:[%s9725_s0 + %s8985_s19]]  }
 0x208   :  { %v752_v2 = vmul.f32 %v9035_v1, %v9035_v1 }
 0x20a   :  { %757 = vrot.lane.b32.xlu1 %v752_v2, %s8966_s14  ;;  %v9091_v2 = vpack.c.bf16 %v1351_v60, %v1348_v59 }
 0x20c   :  { %8398 = vmatprep.subr.bf16.mxu0 %v9091_v2 }
 0x20d   :  { %8400 = vmatpush3.bf16.msra.mxu0 %v9091_v2 }
 0x225   :  { %689 = vadd.xlane.f32.xlu0 %v688_v3  ;;  %v1438_v3 = vsub.f32 %v1326_v57, %v1348_v59  ;;  %v1880_v59 = vld [vmem:[%s7093_s8 + $0x18] sm:$0xff] }
 0x22e   :  { %692 = vadd.xlane.f32.xlu1 %v691_v4  ;;  %v1445_v4 = vsub.f32 %v1327_v58, %v1351_v60  ;;  %v1906_v60 = vld [vmem:[%s9124_s4 + $0x8] sm:$0xff] }
 0x230   :  { %v9113_v37 = vpack.c.bf16 %v1445_v4, %v1438_v3 }
 0x278   :  { %v756_v5 = vpop.permute.xlu0 %755 }
 0x279   :  { %v761_v6 = vsel %vm151_vm0, %v756_v5, 0.0  ;;  %v9093_v5 = vld [vmem:[%s7102_s30] ss:$0 sm:$0xff]  ;;  %s7119_s30 = sld [smem:[%s9725_s0 + %s8987_s27]]  }
 0x27a   :  { %762 = vadd.xlane.f32.xlu0 %v761_v6  ;;  %v1328_v6 = vld [vmem:[%s7105_s26 + $0x10] sm:$0xff] }
 0x27c   :  { %v758_v7 = vpop.permute.xlu1 %757 }
 0x27d   :  { %v764_v8 = vsel %vm151_vm0, %v758_v7, 0.0  ;;  %v1329_v7 = vld [vmem:[%s7105_s26 + $0x18] sm:$0xff]  ;;  %s7110_s26 = sld [smem:[%s9725_s0 + %s8986_s23]]  }
 0x27e   :  { %765 = vadd.xlane.f32.xlu0 %v764_v8 }
 0x2b2   :  { %v690_v9 = vpop.xlane.xlu0 %689 }
 0x2b3   :  { %v695_v10 = vmul.f32 0.03125, %v690_v9  ;;  %v1354_v9 = vand.u32 4294901760, %v1328_v6 }
 0x2b5   :  { %v9045_v11 = vsub.f32 %v8688_v54, %v695_v10  ;;  %v1357_v10 = vand.u32 4294901760, %v1329_v7  ;;  %v1452_v20 = vsub.f32 %v1328_v6, %v1354_v9 }
 0x2b7   :  { %v699_v12 = vmul.f32 %v9045_v11, %v9045_v11  ;;  %v1459_v21 = vsub.f32 %v1329_v7, %v1357_v10  ;;  %v1453_v27 = vand.u32 4294901760, %v1452_v20 }
 0x2b9   :  { %v701_v13 = vsel %vm151_vm0, %v699_v12, 0.0  ;;  %v1439_v12 = vand.u32 4294901760, %v1438_v3  ;;  %v1460_v28 = vand.u32 4294901760, %v1459_v21  ;;  %v1454_v30 = vsub.f32 %v1452_v20, %v1453_v27 }
 0x2ba   :  { %702 = vadd.xlane.f32.xlu0 %v701_v13  ;;  %v9115_v38 = vpack.c.bf16 %v1459_v21, %v1452_v20 }
 0x2bb   :  { %v693_v14 = vpop.xlane.xlu1 %692  ;;  %v1461_v31 = vsub.f32 %v1459_v21, %v1460_v28  ;;  %v1455_v34 = vand.u32 4294901760, %v1454_v30  ;;  %v9119_v40 = vpack.c.bf16 %v1460_v28, %v1453_v27 }
 0x2bc   :  { %v696_v15 = vmul.f32 0.03125, %v693_v14  ;;  %v1446_v14 = vand.u32 4294901760, %v1445_v4 }
 0x2bd   :  { %v1462_v35 = vand.u32 4294901760, %v1461_v31 }
 0x2be   :  { %v9050_v16 = vsub.f32 %v8686_v53, %v696_v15  ;;  %v1447_v19 = vsub.f32 %v1445_v4, %v1446_v14  ;;  %v9117_v39 = vpack.c.bf16 %v1446_v14, %v1439_v12  ;;  %v6279_v4 = vld [vmem:[%s9133_s12] sm:$0xff] }
 0x2bf   :  { %v9111_v36 = vpack.c.bf16 %v1462_v35, %v1455_v34 }
 0x2c0   :  { %v700_v17 = vmul.f32 %v9050_v16, %v9050_v16  ;;  %v1448_v26 = vand.u32 4294901760, %v1447_v19 }
 0x2c2   :  { %v704_v18 = vsel %vm151_vm0, %v700_v17, 0.0  ;;  %v9100_v17 = vpack.c.bf16 %v1357_v10, %v1354_v9  ;;  %v6281_v9 = vld [vmem:[%s9133_s12 + $0x10] sm:$0xff] }
 0x2c3   :  { %705 = vadd.xlane.f32.xlu0 %v704_v18  ;;  %v1440_v18 = vsub.f32 %v1438_v3, %v1439_v12  ;;  %v1907_v3 = vld [vmem:[%s9124_s4 + $0x10] sm:$0xff] }
 0x2c4   :  { %8402 = vmatprep.subr.bf16.mxu0 %v9100_v17 }
 0x2c5   :  { %v1441_v25 = vand.u32 4294901760, %v1440_v18  ;;  %8404 = vmatpush3.bf16.msra.mxu0 %v9100_v17 }
 0x2c7   :  { %v9107_v29 = vpack.c.bf16 %v1448_v26, %v1441_v25 }
 0x2c9   :  { %8406 = vmatprep.subr.bf16.mxu0 %v9107_v29 }
 0x307   :  { %v763_v49 = vpop.xlane.xlu0 %762 }
 0x308   :  { %v767_v50 = vmul.f32 0.03125, %v763_v49 }
 0x30a   :  { %v769_v52 = vadd.f32 1e-05, %v767_v50  ;;  %v1905_v50 = vld [vmem:[%s9124_s4] sm:$0xff] }
 0x30b   :  { %v766_v53 = vpop.xlane.xlu0 %765 }
 0x30c   :  { %8916 = vrsqrt.f32 %v769_v52  ;;  %v768_v54 = vmul.f32 0.03125, %v766_v53  ;;  %v1877_v52 = vld [vmem:[%s7093_s8] sm:$0xff] }
 0x30e   :  { %v770_v56 = vadd.f32 1e-05, %v768_v54  ;;  %v1879_v54 = vld [vmem:[%s7093_s8 + $0x10] sm:$0xff] }
 0x310   :  { %8918 = vrsqrt.f32 %v770_v56  ;;  %v1878_v56 = vld [vmem:[%s7093_s8 + $0x8] sm:$0xff]  ;;  %s7121_s8 = sld [smem:[%s9725_s0 + %s8989_s5]]  }
 0x316   :  { %v8917_v62 = vpop.eup %8916 }
 0x317   :  { %v773_v0 = vmul.f32 %v8917_v62, %v9031_v61 }
 0x319   :  { %v775_v8 = vmul.f32 %v9088_v63, %v773_v0 }
 0x31a   :  { %v8919_v13 = vpop.eup %8918 }
 0x31b   :  { %v777_v61 = vadd.f32 %v9093_v5, %v775_v8  ;;  %v774_v15 = vmul.f32 %v8919_v13, %v9035_v1  ;;  %v1908_v8 = vld [vmem:[%s9124_s4 + $0x18] sm:$0xff]  ;;  %s7120_s4 = sld [smem:[%s9725_s0 + %s8988_s1]]  }
 0x31d   :  { %v779_v22 = vmax.f32 %v777_v61, 0.0  ;;  %v776_v24 = vmul.f32 %v9088_v63, %v774_v15  ;;  %v6280_v15 = vld [vmem:[%s9133_s12 + $0x8] sm:$0xff] }
 0x31f   :  { %1339 = vrot.lane.b32.xlu0 %v779_v22, %s8966_s14  ;;  %v778_v1 = vadd.f32 %v9093_v5, %v776_v24  ;;  %v6282_v22 = vld [vmem:[%s9133_s12 + $0x18] sm:$0xff]  ;;  %s7122_s12 = sld [smem:[%s9725_s0 + %s8990_s9]]  }
 0x321   :  { %v780_v33 = vmax.f32 %v778_v1, 0.0 }
 0x323   :  { %1341 = vrot.lane.b32.xlu1 %v780_v33, %s8966_s14  ;;  %1910 = vperm.xlu0 %8915, %v1905_v50   ;;  %s7109_s14 = sld [smem:[%s9725_s0 + %s8983_s11]]   ;;  %s8998_s11 = smov 32  }
 0x327   :  { %1882 = vperm.xlu1 %8914, %v1877_v52   ;;  %1888 = vperm.xlu0 %8915, %v1879_v54  }
 0x32b   :  { %1885 = vperm.xlu1 %8914, %v1878_v56   ;;  %1891 = vperm.xlu0 %8915, %v1880_v59  }
 0x32f   :  { %1913 = vperm.xlu1 %8914, %v1906_v60   ;;  %6286 = vperm.xlu0 %8915, %v6279_v4  }
 0x333   :  { %1916 = vperm.xlu1 %8914, %v1907_v3   ;;  %6296 = vperm.xlu0 %8915, %v6281_v9  }
 0x337   :  { %1919 = vperm.xlu1 %8914, %v1908_v8  }
 0x33b   :  { %6291 = vperm.xlu1 %8914, %v6280_v15  }
 0x33f   :  { %6301 = vperm.xlu1 %8914, %v6282_v22  }
 0x347   :  { %v703_v42 = vpop.xlane.xlu0 %702 }
 0x348   :  { %v707_v43 = vmul.f32 0.03125, %v703_v42 }
 0x34a   :  { %v709_v44 = vadd.f32 1e-05, %v707_v43 }
 0x34c   :  { %8920 = vrsqrt.f32 %v709_v44 }
 0x350   :  { %v706_v49 = vpop.xlane.xlu0 %705 }
 0x351   :  { %v708_v53 = vmul.f32 0.03125, %v706_v49 }
 0x353   :  { %v710_v57 = vadd.f32 1e-05, %v708_v53 }
 0x355   :  { %8922 = vrsqrt.f32 %v710_v57 }
 0x356   :  { %v8921_v58 = vpop.eup %8920 }
 0x357   :  { %v713_v62 = vmul.f32 %v8921_v58, %v9045_v11 }
 0x359   :  { %v721_v0 = vmul.f32 %v9088_v63, %v713_v62 }
 0x35b   :  { %v729_v6 = vadd.f32 %v9093_v5, %v721_v0 }
 0x35d   :  { %v731_v7 = vmax.f32 %v729_v6, 0.0 }
 0x35f   :  { %v8923_v10 = vpop.eup %8922  ;;  %v793_v12 = vsel %vm151_vm0, %v731_v7, 0  ;;  %v7127_v7 = vld [vmem:[%s7104_s16] ss:$0 sm:$0xff]  ;;  %s7114_s16 = sld [smem:[%s9725_s0 + %s8991_s13]]  }
 0x360   :  { %v714_v11 = vmul.f32 %v8923_v10, %v9050_v16  ;;  %v867_v13 = vand.u32 4294901760, %v793_v12 }
 0x362   :  { %v722_v14 = vmul.f32 %v9088_v63, %v714_v11  ;;  %v868_v61 = vsub.f32 %v793_v12, %v867_v13 }
 0x364   :  { %v869_v18 = vand.u32 4294901760, %v868_v61  ;;  %v730_v19 = vadd.f32 %v9093_v5, %v722_v14 }
 0x366   :  { %v870_v20 = vsub.f32 %v868_v61, %v869_v18  ;;  %v732_v21 = vmax.f32 %v730_v19, 0.0 }
 0x368   :  { %v871_v24 = vand.u32 4294901760, %v870_v20  ;;  %v796_v25 = vsel %vm151_vm0, %v732_v21, 0 }
 0x369   :  { %v877_v26 = vand.u32 4294901760, %v796_v25 }
 0x36a   :  { %7667 = vmatprep.mubr.f32.mxu1 %v871_v24 }
 0x36b   :  { %v878_v16 = vsub.f32 %v796_v25, %v877_v26 }
 0x36d   :  { %v879_v27 = vand.u32 4294901760, %v878_v16 }
 0x36f   :  { %v880_v28 = vsub.f32 %v878_v16, %v879_v27 }
 0x371   :  { %v881_v1 = vand.u32 4294901760, %v880_v28 }
 0x373   :  { %7668 = vmatmul.mubr.f32.vlgmr.msra.gmra.mrb[2].mxu1 %v881_v1 }
 0x374   :  { %8360 = vmatpush3.bf16.msra.mxu1 %v9066_v41  ;;  %7678 = vmatprep.mubr.f32.mxu1 %v867_v13 }
 0x375   :  { %8362 = vmatprep.subr.bf16.mxu1 %v9069_v46 }
 0x378   :  { %8364 = vmatpush3.bf16.msra.mxu1 %v9069_v46 }
 0x379   :  { %8366 = vmatprep.subr.bf16.mxu1 %v9071_v47 }
 0x37b   :  { %7679 = vmatmul.mubr.f32.vlgmr.msra.gmra.mrb[2].mxu1 %v877_v26 }
 0x37c   :  { %8368 = vmatpush3.bf16.msra.mxu1 %v9071_v47  ;;  %7689 = vmatprep.mubr.f32.mxu1 %v868_v61 }
 0x37d   :  { %8370 = vmatprep.subr.bf16.mxu1 %v9073_v48 }
 0x380   :  { %8372 = vmatpush3.bf16.msra.mxu1 %v9073_v48 }
 0x381   :  { %8374 = vmatprep.subr.bf16.mxu1 %v9058_v23 }
 0x383   :  { %7690 = vmatmul.mubr.f32.vlgmr.msra.gmra.mrb[2].mxu1 %v878_v16 }
 0x384   :  { %8376 = vmatpush3.bf16.msra.mxu1 %v9058_v23  ;;  %7700 = vmatprep.mubr.f32.mxu1 %v869_v18 }
 0x385   :  { %8378 = vmatprep.subr.bf16.mxu1 %v9062_v32 }
 0x388   :  { %8380 = vmatpush3.bf16.msra.mxu1 %v9062_v32 }
 0x389   :  { %8382 = vmatprep.subr.bf16.mxu1 %v9075_v51 }
 0x38b   :  { %7701 = vmatmul.mubr.f32.vlgmr.msra.gmra.mrb[2].mxu1 %v879_v27 }
 0x38c   :  { %8384 = vmatpush3.bf16.msra.mxu1 %v9075_v51  ;;  %7711 = vmatprep.mubr.f32.mxu1 %v867_v13 }
 0x38d   :  { %8386 = vmatprep.subr.bf16.mxu1 %v9077_v55 }
 0x390   :  { %8388 = vmatpush3.bf16.msra.mxu1 %v9077_v55 }
 0x391   :  { %v1340_v41 = vpop.permute.xlu0 %1339  ;;  %8390 = vmatprep.subr.bf16.mxu1 %v9058_v23 }
 0x392   :  { %v1343_v46 = vsel %vm151_vm0, %v1340_v41, 0 }
 0x393   :  { %v1416_v47 = vand.u32 4294901760, %v1343_v46  ;;  %7712 = vmatmul.mubr.f32.vlgmr.msra.gmra.mrb[2].mxu1 %v877_v26 }
 0x394   :  { %8392 = vmatpush3.bf16.msra.mxu1 %v9058_v23  ;;  %7722 = vmatprep.mubr.f32.mxu1 %v867_v13  ;;  %v1875_v23 = vlaneseq }
 0x395   :  { %v1417_v48 = vsub.f32 %v1343_v46, %v1416_v47  ;;  %v1342_v63 = vpop.permute.xlu1 %1341  ;;  %8394 = vmatprep.subr.bf16.mxu1 %v9062_v32 }
 0x396   :  { %v1345_v51 = vsel %vm151_vm0, %v1342_v63, 0 }
 0x397   :  { %v1418_v5 = vand.u32 4294901760, %v1417_v48  ;;  %v1426_v30 = vand.u32 4294901760, %v1345_v51 }
 0x398   :  { %8396 = vmatpush3.bf16.msra.mxu1 %v9062_v32  ;;  %v9191_v32 = vand.u32 127, %v1875_v23 }
 0x399   :  { %v1427_v55 = vsub.f32 %v1345_v51, %v1426_v30  ;;  %v1419_v31 = vsub.f32 %v1417_v48, %v1418_v5 }
 0x39b   :  { %v1428_v33 = vand.u32 4294901760, %v1427_v55  ;;  %7723 = vmatmul.mubr.f32.vlgmr.msra.gmra.mrb[2].mxu1 %v877_v26  ;;  %v1420_v34 = vand.u32 4294901760, %v1419_v31 }
 0x39d   :  { %v1429_v35 = vsub.f32 %v1427_v55, %v1428_v33  ;;  %7733 = vmatprep.mubr.f32.mxu0 %v1420_v34 }
 0x39f   :  { %v1430_v42 = vand.u32 4294901760, %v1429_v35 }
 0x3a1   :  { %7734 = vmatmul.mubr.f32.vlgmr.msra.gmra.mrb[2].mxu0 %v1430_v42 }
 0x3a2   :  { %8408 = vmatpush3.bf16.msra.mxu0 %v9107_v29  ;;  %7744 = vmatprep.mubr.f32.mxu0 %v1416_v47  ;;  %v1911_v43 = vpop.permute.xlu0 %1910 }
 0x3a3   :  { %8410 = vmatprep.subr.bf16.mxu0 %v9111_v36  ;;  %vm1921_vm3 = vcmp.eq.s32.totalorder %v9191_v32, %v1911_v43 }
 0x3a6   :  { %8412 = vmatpush3.bf16.msra.mxu0 %v9111_v36  ;;  %v1883_v29 = vpop.permute.xlu1 %1882  ;;  %v8975_v36 = vmov 0.0   ;;  %v1889_v54 = vpop.permute.xlu0 %1888 }
 0x3a7   :  { %8414 = vmatprep.subr.bf16.mxu0 %v9113_v37  ;;  %vm1893_vm1 = vcmp.eq.s32.totalorder %v9191_v32, %v1883_v29  ;;  %v9207_v44 = vsel %vm1921_vm3, 1.0, %v8975_v36  ;;  %vm1895_vm5 = vcmp.eq.s32.totalorder %v9191_v32, %v1889_v54 }
 0x3a8   :  { %v2535_v45 = vsel %vm1933_vm2, %v9207_v44, 0  ;;  %v9226_v59 = vsel %vm1895_vm5, 1.0, %v8975_v36 }
 0x3a9   :  { %7745 = vmatmul.mubr.f32.vlgmr.msra.gmra.mrb[2].mxu0 %v1426_v30  ;;  %v9211_v49 = vsub.f32 %v2535_v45, %v2535_v45  ;;  %v1941_v62 = vsel %vm1933_vm2, %v9226_v59, 0 }
 0x3aa   :  { %8416 = vmatpush3.bf16.msra.mxu0 %v9113_v37  ;;  %7755 = vmatprep.mubr.f32.mxu0 %v1417_v48  ;;  %v9195_v37 = vsel %vm1893_vm1, 1.0, %v8975_v36  ;;  %v1886_v56 = vpop.permute.xlu1 %1885  ;;  %v1892_v57 = vpop.permute.xlu0 %1891  ;;  %v2034_v4 = vsub.f32 %v1941_v62, %v1941_v62 }
 0x3ab   :  { %8418 = vmatprep.subr.bf16.mxu0 %v9115_v38  ;;  %v2615_v50 = vand.u32 4294901760, %v9211_v49  ;;  %vm1894_vm4 = vcmp.eq.s32.totalorder %v9191_v32, %v1886_v56  ;;  %vm1896_vm6 = vcmp.eq.s32.totalorder %v9191_v32, %v1892_v57 }
 0x3ac   :  { %v9220_v58 = vsel %vm1894_vm4, 1.0, %v8975_v36  ;;  %v9234_v0 = vsel %vm1896_vm6, 1.0, %v8975_v36  ;;  %v2035_v13 = vand.u32 4294901760, %v2034_v4 }
 0x3ad   :  { %v2616_v52 = vsub.f32 %v9211_v49, %v2615_v50  ;;  %v1938_v60 = vsel %vm1933_vm2, %v9220_v58, 0  ;;  %v1944_v6 = vsel %vm1933_vm2, %v9234_v0, 0 }
 0x3ae   :  { %8420 = vmatpush3.bf16.msra.mxu0 %v9115_v38  ;;  %v2024_v3 = vsub.f32 %v1938_v60, %v1938_v60  ;;  %v2044_v9 = vsub.f32 %v1944_v6, %v1944_v6  ;;  %v2036_v21 = vsub.f32 %v2034_v4, %v2035_v13 }
 0x3af   :  { %8422 = vmatprep.subr.bf16.mxu0 %v9091_v2  ;;  %v2617_v53 = vand.u32 4294901760, %v2616_v52 }
 0x3b0   :  { %v2025_v10 = vand.u32 4294901760, %v2024_v3  ;;  %v2045_v19 = vand.u32 4294901760, %v2044_v9  ;;  %v2037_v1 = vand.u32 4294901760, %v2036_v21  ;;  %v3141_v21 = vld [vmem:[%s7092_s24 + $0x18] sm:$0xff] }
 0x3b1   :  { %7756 = vmatmul.mubr.f32.vlgmr.msra.gmra.mrb[2].mxu0 %v1427_v55 }
 0x3b2   :  { %8424 = vmatpush3.bf16.msra.mxu0 %v9091_v2  ;;  %7766 = vmatprep.mubr.f32.mxu0 %v1418_v5  ;;  %v2026_v18 = vsub.f32 %v2024_v3, %v2025_v10  ;;  %v2046_v27 = vsub.f32 %v2044_v9, %v2045_v19 }
 0x3b3   :  { %8426 = vmatprep.subr.bf16.mxu0 %v9100_v17 }
 0x3b4   :  { %v2027_v16 = vand.u32 4294901760, %v2026_v18  ;;  %v2047_v63 = vand.u32 4294901760, %v2046_v27  ;;  %v3143_v27 = vld [vmem:[%s7107_s28 + $0x8] sm:$0xff] }
 0x3b6   :  { %8428 = vmatpush3.bf16.msra.mxu0 %v9100_v17 }
 0x3b7   :  { %8430 = vmatprep.subr.bf16.mxu0 %v9117_v39 }
 0x3b9   :  { %7767 = vmatmul.mubr.f32.vlgmr.msra.gmra.mrb[2].mxu0 %v1428_v33 }
 0x3ba   :  { %8432 = vmatpush3.bf16.msra.mxu0 %v9117_v39  ;;  %7777 = vmatprep.mubr.f32.mxu0 %v1416_v47 }
 0x3bb   :  { %8434 = vmatprep.subr.bf16.mxu0 %v9119_v40 }
 0x3be   :  { %8436 = vmatpush3.bf16.msra.mxu0 %v9119_v40 }
 0x3bf   :  { %8438 = vmatprep.subr.bf16.mxu0 %v9091_v2 }
 0x3c1   :  { %7778 = vmatmul.mubr.f32.vlgmr.msra.gmra.mrb[2].mxu0 %v1426_v30 }
 0x3c2   :  { %8440 = vmatpush3.bf16.msra.mxu0 %v9091_v2  ;;  %7788 = vmatprep.mubr.f32.mxu0 %v1416_v47  ;;  %v1935_v2 = vsel %vm1933_vm2, %v9195_v37, 0 }
 0x3c3   :  { %8442 = vmatprep.subr.bf16.mxu0 %v9100_v17  ;;  %v9199_v38 = vsub.f32 %v1935_v2, %v1935_v2 }
 0x3c6   :  { %8444 = vmatpush3.bf16.msra.mxu0 %v9100_v17  ;;  %v2015_v17 = vand.u32 4294901760, %v9199_v38 }
 0x3c8   :  { %v2016_v39 = vsub.f32 %v9199_v38, %v2015_v17 }
 0x3c9   :  { %7789 = vmatmul.mubr.f32.vlgmr.msra.gmra.mrb[2].mxu0 %v1426_v30  ;;  %v1914_v30 = vpop.permute.xlu1 %1913 }
 0x3ca   :  { %v2017_v40 = vand.u32 4294901760, %v2016_v39  ;;  %7855 = vmatprep.mubr.f32.mxu0 %v2617_v53  ;;  %vm1922_vm7 = vcmp.eq.s32.totalorder %v9191_v32, %v1914_v30 }
 0x3cb   :  { %v9255_v31 = vsel %vm1922_vm7, 1.0, %v8975_v36 }
 0x3cc   :  { %7795 = vmatprep.mubr.f32.mxu1 %v2017_v40  ;;  %v2538_v35 = vsel %vm1933_vm2, %v9255_v31, 0 }
 0x3cd   :  { %v1917_v55 = vpop.permute.xlu1 %1916  ;;  %v2624_v2 = vsub.f32 %v2538_v35, %v2538_v35 }
 0x3ce   :  { %vm1923_vm8 = vcmp.eq.s32.totalorder %v9191_v32, %v1917_v55 }
 0x3cf   :  { %v9258_v34 = vsel %vm1923_vm8, 1.0, %v8975_v36  ;;  %v2625_v53 = vand.u32 4294901760, %v2624_v2 }
 0x3d0   :  { %v2541_v42 = vsel %vm1933_vm2, %v9258_v34, 0 }
 0x3d1   :  { %v1920_v33 = vpop.permute.xlu1 %1919 }
 0x3d2   :  { %vm1924_vm9 = vcmp.eq.s32.totalorder %v9191_v32, %v1920_v33 }
 0x3d3   :  { %v9268_v29 = vsel %vm1924_vm9, 1.0, %v8975_v36 }
 0x3d4   :  { %v2544_v32 = vsel %vm1933_vm2, %v9268_v29, 0 }
 0x3d5   :  { %v2644_v45 = vsub.f32 %v2544_v32, %v2544_v32 }
 0x3d7   :  { %v2645_v6 = vand.u32 4294901760, %v2644_v45 }
 0x46e   :  { %v7724_v8 = vpop.f32.mrb[2].mxu1 }
 0x46f   :  { %v8689_v12 = vadd.f32 %v7724_v8, %v7127_v7  ;;  %v1316_v11 = vpop.f32.mrb[3].mxu1 }
 0x470   :  { %v8690_v14 = vadd.f32 %v7127_v7, %v1316_v11  ;;  %v2646_v11 = vsub.f32 %v2644_v45, %v2645_v6 }
 0x471   :  { %v1950_v61 = vand.u32 4294901760, %v8689_v12 }
 0x472   :  { %v1947_v15 = vand.u32 4294901760, %v8690_v14  ;;  %v2647_v18 = vand.u32 4294901760, %v2646_v11 }
 0x473   :  { %v2062_v20 = vsub.f32 %v8689_v12, %v1950_v61 }
 0x474   :  { %v8445_v22 = vpack.c.bf16 %v1950_v61, %v1947_v15  ;;  %v2055_v24 = vsub.f32 %v8690_v14, %v1947_v15 }
 0x475   :  { %v2063_v25 = vand.u32 4294901760, %v2062_v20 }
 0x476   :  { %v2056_v26 = vand.u32 4294901760, %v2055_v24  ;;  %8446 = vmatprep.subr.bf16.mxu1 %v8445_v22  ;;  %v8453_v28 = vpack.c.bf16 %v2062_v20, %v2055_v24 }
 0x477   :  { %8448 = vmatpush3.bf16.msra.mxu1 %v8445_v22  ;;  %v2064_v41 = vsub.f32 %v2062_v20, %v2063_v25 }
 0x478   :  { %v2057_v46 = vsub.f32 %v2055_v24, %v2056_v26  ;;  %v8461_v47 = vpack.c.bf16 %v2063_v25, %v2056_v26  ;;  %v3154_v26 = vsel %vm1933_vm2, %v3141_v21, 0 }
 0x479   :  { %v2065_v48 = vand.u32 4294901760, %v2064_v41  ;;  %v3160_v41 = vand.u32 4294901760, %v3143_v27 }
 0x47a   :  { %7796 = vmatmul.mubr.f32.vlgmr.msra.gmra.mrb[4].mxu1 %v2027_v16  ;;  %v2058_v51 = vand.u32 4294901760, %v2057_v46  ;;  %v3142_v16 = vld [vmem:[%s7107_s28] sm:$0xff]  ;;  %s7113_s28 = sld [smem:[%s9725_s0 + %s8994_s25]]  }
 0x47b   :  { %7798 = vmatprep.mubr.f32.mxu1 %v2037_v1  ;;  %v3157_v1 = vand.u32 4294901760, %v3142_v16 }
 0x47c   :  { %v8449_v5 = vpack.c.bf16 %v2065_v48, %v2058_v51 }
 0x47d   :  { %v8493_v51 = vpack.c.bf16 %v3160_v41, %v3157_v1  ;;  %v3265_v55 = vsub.f32 %v3142_v16, %v3157_v1 }
 0x47e   :  { %7799 = vmatmul.mubr.f32.gmra.mrb[6].mxu1 %v2047_v63  ;;  %8450 = vmatprep.subr.bf16.mxu1 %v8449_v5 }
 0x47f   :  { %8452 = vmatpush3.bf16.msra.mxu1 %v8449_v5  ;;  %7805 = vmatprep.mubr.msk.f32.mxu1 %vm1933_vm2, %v9195_v37 }
 0x480   :  { %8454 = vmatprep.subr.bf16.mxu1 %v8453_v28 }
 0x482   :  { %7806 = vmatmul.mubr.msk.f32.vlgmr.msra.gmra.mrb[4].mxu1 %vm1933_vm2, %v9220_v58 }
 0x483   :  { %8456 = vmatpush3.bf16.msra.mxu1 %v8453_v28  ;;  %7808 = vmatprep.mubr.msk.f32.mxu1 %vm1933_vm2, %v9226_v59  ;;  %v9329_v28 = vand.u32 4294901760, %v3154_v26 }
 0x484   :  { %8458 = vmatprep.subr.bf16.mxu1 %v8445_v22 }
 0x485   :  { %v9341_v63 = vsub.f32 %v3154_v26, %v9329_v28 }
 0x486   :  { %7809 = vmatmul.mubr.msk.f32.gmra.mrb[6].mxu1 %vm1933_vm2, %v9234_v0 }
 0x487   :  { %7815 = vmatprep.mubr.f32.mxu1 %v9199_v38  ;;  %v7128_v38 = vld [vmem:[%s7106_s20] ss:$0 sm:$0xff]  ;;  %v9353_v33 = vand.u32 4294901760, %v9341_v63  ;;  %s7111_s20 = sld [smem:[%s9725_s0 + %s8992_s17]]  }
 0x48a   :  { %7816 = vmatmul.mubr.f32.vlgmr.msra.gmra.mrb[4].mxu1 %v2024_v3 }
 0x48b   :  { %8460 = vmatpush3.bf16.msra.mxu1 %v8445_v22  ;;  %7818 = vmatprep.mubr.f32.mxu1 %v2034_v4  ;;  %v2626_v4 = vsub.f32 %v2624_v2, %v2625_v53 }
 0x48c   :  { %8462 = vmatprep.subr.bf16.mxu1 %v8461_v47 }
 0x48d   :  { %v2627_v12 = vand.u32 4294901760, %v2626_v4 }
 0x48e   :  { %7819 = vmatmul.mubr.f32.gmra.mrb[6].mxu1 %v2044_v9 }
 0x48f   :  { %7825 = vmatprep.mubr.f32.mxu1 %v2015_v17  ;;  %v2634_v17 = vsub.f32 %v2541_v42, %v2541_v42 }
 0x491   :  { %v2635_v56 = vand.u32 4294901760, %v2634_v17 }
 0x492   :  { %7826 = vmatmul.mubr.f32.vlgmr.msra.gmra.mrb[4].mxu1 %v2025_v10 }
 0x493   :  { %8464 = vmatpush3.bf16.msra.mxu1 %v8461_v47  ;;  %7828 = vmatprep.mubr.f32.mxu1 %v2035_v13  ;;  %v2636_v8 = vsub.f32 %v2634_v17, %v2635_v56 }
 0x494   :  { %8466 = vmatprep.subr.bf16.mxu1 %v8445_v22 }
 0x496   :  { %7829 = vmatmul.mubr.f32.gmra.mrb[6].mxu1 %v2045_v19 }
 0x497   :  { %7835 = vmatprep.mubr.msk.f32.mxu1 %vm1933_vm2, %v9195_v37 }
 0x49a   :  { %7836 = vmatmul.mubr.msk.f32.vlgmr.msra.gmra.mrb[4].mxu1 %vm1933_vm2, %v9220_v58 }
 0x49b   :  { %8468 = vmatpush3.bf16.msra.mxu1 %v8445_v22  ;;  %7838 = vmatprep.mubr.msk.f32.mxu1 %vm1933_vm2, %v9226_v59 }
 0x49c   :  { %v7790_v39 = vpop.f32.mrb[2].mxu0  ;;  %8494 = vmatprep.subr.bf16.mxu1 %v8493_v51 }
 0x49d   :  { %v8691_v40 = vadd.f32 %v7790_v39, %v7128_v38  ;;  %v1865_v43 = vpop.f32.mrb[3].mxu0 }
 0x49e   :  { %v8692_v52 = vadd.f32 %v7128_v38, %v1865_v43  ;;  %7839 = vmatmul.mubr.msk.f32.gmra.mrb[6].mxu1 %vm1933_vm2, %v9234_v0  ;;  %v3256_v38 = vsub.f32 %v9341_v63, %v9353_v33 }
 0x49f   :  { %v2550_v54 = vand.u32 4294901760, %v8691_v40  ;;  %7845 = vmatprep.mubr.msk.f32.mxu1 %vm1933_vm2, %v9195_v37 }
 0x4a0   :  { %v2547_v57 = vand.u32 4294901760, %v8692_v52 }
 0x4a1   :  { %v2662_v60 = vsub.f32 %v8691_v40, %v2550_v54 }
 0x4a2   :  { %v8469_v62 = vpack.c.bf16 %v2550_v54, %v2547_v57  ;;  %v2655_v3 = vsub.f32 %v8692_v52, %v2547_v57  ;;  %7846 = vmatmul.mubr.msk.f32.vlgmr.msra.gmra.mrb[4].mxu1 %vm1933_vm2, %v9220_v58  ;;  %v2637_v58 = vand.u32 4294901760, %v2636_v8 }
 0x4a3   :  { %v2663_v7 = vand.u32 4294901760, %v2662_v60  ;;  %7848 = vmatprep.mubr.msk.f32.mxu1 %vm1933_vm2, %v9226_v59  ;;  %8496 = vmatpush3.bf16.msra.mxu1 %v8493_v51 }
 0x4a4   :  { %v2656_v9 = vand.u32 4294901760, %v2655_v3  ;;  %8470 = vmatprep.subr.bf16.mxu0 %v8469_v62  ;;  %v8477_v10 = vpack.c.bf16 %v2662_v60, %v2655_v3 }
 0x4a5   :  { %8472 = vmatpush3.bf16.msra.mxu0 %v8469_v62  ;;  %v2664_v37 = vsub.f32 %v2662_v60, %v2663_v7 }
 0x4a6   :  { %7849 = vmatmul.mubr.msk.f32.gmra.mrb[6].mxu1 %vm1933_vm2, %v9234_v0  ;;  %v2657_v13 = vsub.f32 %v2655_v3, %v2656_v9  ;;  %v8485_v14 = vpack.c.bf16 %v2663_v7, %v2656_v9  ;;  %v3745_v3 = vld [vmem:[%s7108_s2 + $0x8] sm:$0xff] }
 0x4a7   :  { %v2665_v61 = vand.u32 4294901760, %v2664_v37 }
 0x4a8   :  { %7856 = vmatmul.mubr.f32.vlgmr.msra.gmra.mrb[4].mxu0 %v2627_v12  ;;  %v2658_v15 = vand.u32 4294901760, %v2657_v13 }
 0x4a9   :  { %7858 = vmatprep.mubr.f32.mxu0 %v2637_v58 }
 0x4aa   :  { %v8473_v59 = vpack.c.bf16 %v2665_v61, %v2658_v15 }
 0x4ac   :  { %7859 = vmatmul.mubr.f32.gmra.mrb[6].mxu0 %v2647_v18  ;;  %8474 = vmatprep.subr.bf16.mxu0 %v8473_v59 }
 0x4ad   :  { %8476 = vmatpush3.bf16.msra.mxu0 %v8473_v59  ;;  %7865 = vmatprep.mubr.msk.f32.mxu0 %vm1933_vm2, %v9207_v44 }
 0x4ae   :  { %8478 = vmatprep.subr.bf16.mxu0 %v8477_v10 }
 0x4b0   :  { %7866 = vmatmul.mubr.msk.f32.vlgmr.msra.gmra.mrb[4].mxu0 %vm1933_vm2, %v9255_v31 }
 0x4b1   :  { %7868 = vmatprep.mubr.msk.f32.mxu0 %vm1933_vm2, %v9258_v34  ;;  %8480 = vmatpush3.bf16.msra.mxu0 %v8477_v10 }
 0x4b2   :  { %8482 = vmatprep.subr.bf16.mxu0 %v8469_v62 }
 0x4b4   :  { %7869 = vmatmul.mubr.msk.f32.gmra.mrb[6].mxu0 %vm1933_vm2, %v9268_v29 }
 0x4b5   :  { %7875 = vmatprep.mubr.f32.mxu0 %v9211_v49  ;;  %v3139_v49 = vld [vmem:[%s7092_s24 + $0x8] sm:$0xff] }
 0x4b6   :  { %v3148_v19 = vsel %vm1933_vm2, %v3139_v49, 0 }
 0x4b7   :  { %v9324_v24 = vand.u32 4294901760, %v3148_v19 }
 0x4b8   :  { %7876 = vmatmul.mubr.f32.vlgmr.msra.gmra.mrb[4].mxu0 %v2624_v2 }
 0x4b9   :  { %8484 = vmatpush3.bf16.msra.mxu0 %v8469_v62  ;;  %7878 = vmatprep.mubr.f32.mxu0 %v2634_v17  ;;  %v9335_v47 = vsub.f32 %v3148_v19, %v9324_v24 }
 0x4ba   :  { %8486 = vmatprep.subr.bf16.mxu0 %v8485_v14 }
 0x4bb   :  { %v9347_v30 = vand.u32 4294901760, %v9335_v47 }
 0x4bc   :  { %7879 = vmatmul.mubr.f32.gmra.mrb[6].mxu0 %v2644_v45 }
 0x4bd   :  { %7885 = vmatprep.mubr.f32.mxu0 %v2615_v50  ;;  %v3140_v50 = vld [vmem:[%s7092_s24 + $0x10] sm:$0xff]  ;;  %v3236_v42 = vsub.f32 %v9335_v47, %v9347_v30 }
 0x4be   :  { %v3151_v20 = vsel %vm1933_vm2, %v3140_v50, 0 }
 0x4bf   :  { %v9326_v25 = vand.u32 4294901760, %v3151_v20  ;;  %v9365_v39 = vand.u32 4294901760, %v3236_v42 }
 0x4c0   :  { %7886 = vmatmul.mubr.f32.vlgmr.msra.gmra.mrb[4].mxu0 %v2625_v53  ;;  %v9371_v53 = vand.u32 4294901760, %v3256_v38 }
 0x4c1   :  { %8488 = vmatpush3.bf16.msra.mxu0 %v8485_v14  ;;  %7888 = vmatprep.mubr.f32.mxu0 %v2635_v56  ;;  %v9338_v48 = vsub.f32 %v3151_v20, %v9326_v25 }
 0x4c2   :  { %8490 = vmatprep.subr.bf16.mxu0 %v8469_v62 }
 0x4c4   :  { %7889 = vmatmul.mubr.f32.gmra.mrb[6].mxu0 %v2645_v6  ;;  %v3762_v6 = vand.u32 4294901760, %v3745_v3 }
 0x4c5   :  { %7895 = vmatprep.mubr.msk.f32.mxu0 %vm1933_vm2, %v9207_v44 }
 0x4c6   :  { %v3874_v9 = vsub.f32 %v3745_v3, %v3762_v6 }
 0x4c8   :  { %7896 = vmatmul.mubr.msk.f32.vlgmr.msra.gmra.mrb[4].mxu0 %vm1933_vm2, %v9255_v31  ;;  %v3875_v37 = vand.u32 4294901760, %v3874_v9 }
 0x4c9   :  { %8492 = vmatpush3.bf16.msra.mxu0 %v8469_v62  ;;  %7898 = vmatprep.mubr.msk.f32.mxu0 %vm1933_vm2, %v9258_v34  ;;  %v3744_v62 = vld [vmem:[%s7108_s2] sm:$0xff]  ;;  %s9659_s2 = sld [smem:[%s9725_s0 + %s8995_s29]]  }
 0x4ca   :  { %v3759_v4 = vand.u32 4294901760, %v3744_v62  ;;  %v3876_v11 = vsub.f32 %v3874_v9, %v3875_v37 }
 0x4cc   :  { %7899 = vmatmul.mubr.msk.f32.gmra.mrb[6].mxu0 %vm1933_vm2, %v9268_v29  ;;  %v9393_v7 = vpack.c.bf16 %v3762_v6, %v3759_v4  ;;  %v3867_v8 = vsub.f32 %v3744_v62, %v3759_v4  ;;  %v3877_v14 = vand.u32 4294901760, %v3876_v11 }
 0x4cd   :  { %7905 = vmatprep.mubr.msk.f32.mxu0 %vm1933_vm2, %v9207_v44  ;;  %v3138_v44 = vld [vmem:[%s7092_s24] sm:$0xff]  ;;  %s7112_s24 = sld [smem:[%s9725_s0 + %s8993_s21]]  }
 0x4ce   :  { %v3145_v0 = vsel %vm1933_vm2, %v3138_v44, 0  ;;  %8518 = vmatprep.subr.bf16.mxu0 %v9393_v7  ;;  %v3868_v10 = vand.u32 4294901760, %v3867_v8  ;;  %v8525_v61 = vpack.c.bf16 %v3874_v9, %v3867_v8 }
 0x4cf   :  { %v9322_v22 = vand.u32 4294901760, %v3145_v0 }
 0x4d0   :  { %7906 = vmatmul.mubr.msk.f32.vlgmr.msra.gmra.mrb[4].mxu0 %vm1933_vm2, %v9255_v31  ;;  %v9350_v31 = vand.u32 4294901760, %v9338_v48  ;;  %v3869_v12 = vsub.f32 %v3867_v8, %v3868_v10  ;;  %v9402_v15 = vpack.c.bf16 %v3875_v37, %v3868_v10  ;;  %v5101_v10 = vld [vmem:[%s7116_s6] sm:$0xff]  ;;  %v5102_v37 = vld [vmem:[%s7116_s6 + $0x8] sm:$0xff]  ;;  %s7095_s6 = sld [smem:[%s9725_s0 + %s8996_s3]]  }
 0x4d1   :  { %7908 = vmatprep.mubr.msk.f32.mxu0 %vm1933_vm2, %v9258_v34  ;;  %v9332_v46 = vsub.f32 %v3145_v0, %v9322_v22  ;;  %v3272_v34 = vsub.f32 %v3143_v27, %v3160_v41  ;;  %8520 = vmatpush3.bf16.msra.mxu0 %v9393_v7  ;;  %v5107_v11 = vand.u32 4294901760, %v5102_v37 }
 0x4d2   :  { %v3246_v2 = vsub.f32 %v9338_v48, %v9350_v31  ;;  %v3870_v13 = vand.u32 4294901760, %v3869_v12  ;;  %v5104_v12 = vand.u32 4294901760, %v5101_v10 }
 0x4d3   :  { %v9344_v5 = vand.u32 4294901760, %v9332_v46  ;;  %v3273_v17 = vand.u32 4294901760, %v3272_v34  ;;  %v8501_v57 = vpack.c.bf16 %v3272_v34, %v3265_v55 }
 0x4d4   :  { %7909 = vmatmul.mubr.msk.f32.gmra.mrb[6].mxu0 %vm1933_vm2, %v9268_v29  ;;  %v3266_v29 = vand.u32 4294901760, %v3265_v55  ;;  %v9367_v43 = vand.u32 4294901760, %v3246_v2  ;;  %v8521_v58 = vpack.c.bf16 %v3877_v14, %v3870_v13  ;;  %v5212_v13 = vsub.f32 %v5101_v10, %v5104_v12 }
 0x4d5   :  { %v3226_v35 = vsub.f32 %v9332_v46, %v9344_v5  ;;  %v3274_v45 = vsub.f32 %v3272_v34, %v3273_v17  ;;  %v5219_v14 = vsub.f32 %v5102_v37, %v5107_v11 }
 0x4d6   :  { %v3267_v40 = vsub.f32 %v3265_v55, %v3266_v29  ;;  %v8509_v60 = vpack.c.bf16 %v3273_v17, %v3266_v29  ;;  %8522 = vmatprep.subr.bf16.mxu0 %v8521_v58 }
 0x4d7   :  { %v9363_v32 = vand.u32 4294901760, %v3226_v35  ;;  %v3275_v54 = vand.u32 4294901760, %v3274_v45 }
 0x4d8   :  { %v3268_v52 = vand.u32 4294901760, %v3267_v40 }
 0x4d9   :  { %7915 = vmatprep.mubr.f32.mxu1 %v9363_v32 }
 0x4da   :  { %7916 = vmatmul.mubr.f32.vlgmr.msra.gmra.mrb[8].mxu1 %v9365_v39  ;;  %v8497_v56 = vpack.c.bf16 %v3275_v54, %v3268_v52 }
 0x4db   :  { %7918 = vmatprep.mubr.f32.mxu1 %v9367_v43 }
 0x4dc   :  { %8498 = vmatprep.subr.bf16.mxu1 %v8497_v56 }
 0x4dd   :  { %8500 = vmatpush3.bf16.msra.mxu1 %v8497_v56 }
 0x4de   :  { %7919 = vmatmul.mubr.f32.gmra.mrb[10].mxu1 %v9371_v53  ;;  %8502 = vmatprep.subr.bf16.mxu1 %v8501_v57 }
 0x4df   :  { %7925 = vmatprep.mubr.f32.mxu1 %v9322_v22 }
 0x4e2   :  { %7926 = vmatmul.mubr.f32.vlgmr.msra.gmra.mrb[8].mxu1 %v9324_v24 }
 0x4e3   :  { %7928 = vmatprep.mubr.f32.mxu1 %v9326_v25  ;;  %8504 = vmatpush3.bf16.msra.mxu1 %v8501_v57 }
 0x4e4   :  { %8506 = vmatprep.subr.bf16.mxu1 %v8493_v51 }
 0x4e6   :  { %7929 = vmatmul.mubr.f32.gmra.mrb[10].mxu1 %v9329_v28 }
 0x4e7   :  { %7935 = vmatprep.mubr.f32.mxu1 %v9332_v46 }
 0x4ea   :  { %7936 = vmatmul.mubr.f32.vlgmr.msra.gmra.mrb[8].mxu1 %v9335_v47 }
 0x4eb   :  { %7938 = vmatprep.mubr.f32.mxu1 %v9338_v48  ;;  %8508 = vmatpush3.bf16.msra.mxu1 %v8493_v51 }
 0x4ec   :  { %8510 = vmatprep.subr.bf16.mxu1 %v8509_v60 }
 0x4ee   :  { %7939 = vmatmul.mubr.f32.gmra.mrb[10].mxu1 %v9341_v63 }
 0x4ef   :  { %7945 = vmatprep.mubr.f32.mxu1 %v9344_v5 }
 0x4f2   :  { %7946 = vmatmul.mubr.f32.vlgmr.msra.gmra.mrb[8].mxu1 %v9347_v30 }
 0x4f3   :  { %7948 = vmatprep.mubr.f32.mxu1 %v9350_v31  ;;  %8512 = vmatpush3.bf16.msra.mxu1 %v8509_v60 }
 0x4f4   :  { %8514 = vmatprep.subr.bf16.mxu1 %v8493_v51 }
 0x4f6   :  { %7949 = vmatmul.mubr.f32.gmra.mrb[10].mxu1 %v9353_v33 }
 0x4f7   :  { %7955 = vmatprep.mubr.f32.mxu1 %v9322_v22 }
 0x4fa   :  { %7956 = vmatmul.mubr.f32.vlgmr.msra.gmra.mrb[8].mxu1 %v9324_v24 }
 0x4fb   :  { %7958 = vmatprep.mubr.f32.mxu1 %v9326_v25  ;;  %8516 = vmatpush3.bf16.msra.mxu1 %v8493_v51 }
 0x4fe   :  { %7959 = vmatmul.mubr.f32.gmra.mrb[10].mxu1 %v9329_v28 }
 0x4ff   :  { %7965 = vmatprep.mubr.f32.mxu1 %v9322_v22 }
 0x502   :  { %7966 = vmatmul.mubr.f32.vlgmr.msra.gmra.mrb[8].mxu1 %v9324_v24 }
 0x503   :  { %7968 = vmatprep.mubr.f32.mxu1 %v9326_v25 }
 0x506   :  { %7969 = vmatmul.mubr.f32.gmra.mrb[10].mxu1 %v9329_v28 }
 0x575   :  { %v7847_v18 = vpop.f32.mrb[4].mxu1 }
 0x576   :  { %v2512_v59 = vpop.f32.mrb[5].mxu1 }
 0x579   :  { %v7850_v44 = vpop.f32.mrb[6].mxu1 }
 0x57a   :  { %v2524_v49 = vpop.f32.mrb[7].mxu1 }
 0x5a3   :  { %v7907_v50 = vpop.f32.mrb[4].mxu0 }
 0x5a4   :  { %v3135_v0 = vmul.f32 %v7907_v50, %v7847_v18  ;;  %v3112_v19 = vpop.f32.mrb[5].mxu0  ;;  %v8589_v18 = vpack.c.bf16 %v5107_v11, %v5104_v12 }
 0x5a5   :  { %v3134_v20 = vmul.f32 %v3112_v19, %v2512_v59  ;;  %v5099_v19 = vld [vmem:[%s7115_s10] sm:$0xff] }
 0x5a6   :  { %v3750_v21 = vsel %vm1933_vm2, %v3135_v0, 0  ;;  %v8597_v0 = vpack.c.bf16 %v5219_v14, %v5212_v13 }
 0x5a7   :  { %v9405_v26 = vand.u32 4294901760, %v3750_v21  ;;  %v3747_v16 = vsel %vm1933_vm2, %v3134_v20, 0  ;;  %v7910_v27 = vpop.f32.mrb[6].mxu0  ;;  %v5100_v20 = vld [vmem:[%s7115_s10 + $0x8] sm:$0xff]  ;;  %s7096_s10 = sld [smem:[%s9725_s0 + %s8997_s7]]  }
 0x5a8   :  { %v9408_v1 = vand.u32 4294901760, %v3747_v16  ;;  %v3137_v41 = vmul.f32 %v7910_v27, %v7850_v44  ;;  %v3124_v51 = vpop.f32.mrb[7].mxu0 }
 0x5a9   :  { %v9411_v55 = vsub.f32 %v3750_v21, %v9405_v26  ;;  %v3136_v34 = vmul.f32 %v3124_v51, %v2524_v49  ;;  %v5692_v21 = vand.u32 4294901760, %v5099_v19 }
 0x5aa   :  { %v9414_v35 = vsub.f32 %v3747_v16, %v9408_v1  ;;  %v3756_v42 = vsel %vm1933_vm2, %v3137_v41, 0  ;;  %v5695_v16 = vand.u32 4294901760, %v5100_v20 }
 0x5ab   :  { %v9418_v29 = vand.u32 4294901760, %v9411_v55  ;;  %v9420_v2 = vand.u32 4294901760, %v3756_v42  ;;  %v3753_v38 = vsel %vm1933_vm2, %v3136_v34, 0  ;;  %v5800_v27 = vsub.f32 %v5099_v19, %v5692_v21 }
 0x5ac   :  { %v9423_v17 = vand.u32 4294901760, %v3753_v38  ;;  %v9426_v40 = vand.u32 4294901760, %v9414_v35  ;;  %v5807_v41 = vsub.f32 %v5100_v20, %v5695_v16  ;;  %v8613_v34 = vpack.c.bf16 %v5695_v16, %v5692_v21 }
 0x5ad   :  { %v3838_v45 = vsub.f32 %v9411_v55, %v9418_v29  ;;  %v9431_v52 = vsub.f32 %v3756_v42, %v9420_v2  ;;  %v5801_v51 = vand.u32 4294901760, %v5800_v27 }
 0x5ae   :  { %v9434_v54 = vsub.f32 %v3753_v38, %v9423_v17  ;;  %v3828_v56 = vsub.f32 %v9414_v35, %v9426_v40 }
 0x5af   :  { %v9439_v57 = vand.u32 4294901760, %v9431_v52  ;;  %v3839_v3 = vand.u32 4294901760, %v3838_v45 }
 0x5b0   :  { %v3829_v60 = vand.u32 4294901760, %v3828_v56  ;;  %v9442_v62 = vand.u32 4294901760, %v9434_v54 }
 0x5b1   :  { %v3858_v4 = vsub.f32 %v9431_v52, %v9439_v57 }
 0x5b2   :  { %7975 = vmatprep.mubr.f32.mxu0 %v3829_v60  ;;  %v3848_v6 = vsub.f32 %v9434_v54, %v9442_v62 }
 0x5b3   :  { %7976 = vmatmul.mubr.f32.vlgmr.msra.gmra.mrb[8].mxu0 %v3839_v3  ;;  %v3859_v9 = vand.u32 4294901760, %v3858_v4 }
 0x5b4   :  { %v3849_v8 = vand.u32 4294901760, %v3848_v6  ;;  %8524 = vmatpush3.bf16.msra.mxu0 %v8521_v58  ;;  %v5213_v58 = vand.u32 4294901760, %v5212_v13 }
 0x5b5   :  { %8526 = vmatprep.subr.bf16.mxu0 %v8525_v61 }
 0x5b6   :  { %7978 = vmatprep.mubr.f32.mxu0 %v3849_v8  ;;  %v5214_v59 = vsub.f32 %v5212_v13, %v5213_v58 }
 0x5b7   :  { %7979 = vmatmul.mubr.f32.gmra.mrb[10].mxu0 %v3859_v9 }
 0x5b8   :  { %7985 = vmatprep.mubr.f32.mxu0 %v9408_v1  ;;  %v5215_v49 = vand.u32 4294901760, %v5214_v59 }
 0x5bb   :  { %7986 = vmatmul.mubr.f32.vlgmr.msra.gmra.mrb[8].mxu0 %v9405_v26 }
 0x5bc   :  { %7988 = vmatprep.mubr.f32.mxu0 %v9423_v17  ;;  %8528 = vmatpush3.bf16.msra.mxu0 %v8525_v61  ;;  %v5220_v61 = vand.u32 4294901760, %v5219_v14 }
 0x5bd   :  { %8530 = vmatprep.subr.bf16.mxu0 %v9393_v7 }
 0x5be   :  { %v5221_v44 = vsub.f32 %v5219_v14, %v5220_v61 }
 0x5bf   :  { %7989 = vmatmul.mubr.f32.gmra.mrb[10].mxu0 %v9420_v2 }
 0x5c0   :  { %7995 = vmatprep.mubr.f32.mxu0 %v9414_v35 }
 0x5c3   :  { %7996 = vmatmul.mubr.f32.vlgmr.msra.gmra.mrb[8].mxu0 %v9411_v55 }
 0x5c4   :  { %7998 = vmatprep.mubr.f32.mxu0 %v9434_v54  ;;  %8532 = vmatpush3.bf16.msra.mxu0 %v9393_v7 }
 0x5c5   :  { %8534 = vmatprep.subr.bf16.mxu0 %v9402_v15 }
 0x5c7   :  { %7999 = vmatmul.mubr.f32.gmra.mrb[10].mxu0 %v9431_v52 }
 0x5c8   :  { %8005 = vmatprep.mubr.f32.mxu0 %v9426_v40 }
 0x5cb   :  { %8006 = vmatmul.mubr.f32.vlgmr.msra.gmra.mrb[8].mxu0 %v9418_v29 }
 0x5cc   :  { %8008 = vmatprep.mubr.f32.mxu0 %v9442_v62  ;;  %8536 = vmatpush3.bf16.msra.mxu0 %v9402_v15  ;;  %v5222_v15 = vand.u32 4294901760, %v5221_v44 }
 0x5cd   :  { %8538 = vmatprep.subr.bf16.mxu0 %v9393_v7 }
 0x5ce   :  { %v8593_v50 = vpack.c.bf16 %v5222_v15, %v5215_v49 }
 0x5cf   :  { %8009 = vmatmul.mubr.f32.gmra.mrb[10].mxu0 %v9439_v57 }
 0x5d0   :  { %8015 = vmatprep.mubr.f32.mxu0 %v9408_v1 }
 0x5d3   :  { %8016 = vmatmul.mubr.f32.vlgmr.msra.gmra.mrb[8].mxu0 %v9405_v26 }
 0x5d4   :  { %8018 = vmatprep.mubr.f32.mxu0 %v9423_v17  ;;  %8540 = vmatpush3.bf16.msra.mxu0 %v9393_v7  ;;  %v8605_v7 = vpack.c.bf16 %v5220_v61, %v5213_v58 }
 0x5d5   :  { %8590 = vmatprep.subr.bf16.mxu0 %v8589_v18 }
 0x5d7   :  { %8019 = vmatmul.mubr.f32.gmra.mrb[10].mxu0 %v9420_v2 }
 0x5d8   :  { %8025 = vmatprep.mubr.f32.mxu0 %v9408_v1 }
 0x5db   :  { %8026 = vmatmul.mubr.f32.vlgmr.msra.gmra.mrb[8].mxu0 %v9405_v26 }
 0x5dc   :  { %8028 = vmatprep.mubr.f32.mxu0 %v9423_v17  ;;  %8592 = vmatpush3.bf16.msra.mxu0 %v8589_v18 }
 0x5dd   :  { %8594 = vmatprep.subr.bf16.mxu0 %v8593_v50 }
 0x5df   :  { %8029 = vmatmul.mubr.f32.gmra.mrb[10].mxu0 %v9420_v2 }
 0x5e0   :  { %8119 = vmatprep.mubr.f32.mxu0 %v3829_v60 }
 0x5e3   :  { %8120 = vmatmul.mubr.f32.vlgmr.msra.gmra.mrb[12].mxu0 %v3839_v3 }
 0x5e4   :  { %8122 = vmatprep.mubr.f32.mxu0 %v3849_v8  ;;  %8596 = vmatpush3.bf16.msra.mxu0 %v8593_v50 }
 0x5e5   :  { %8598 = vmatprep.subr.bf16.mxu0 %v8597_v0 }
 0x5e7   :  { %8123 = vmatmul.mubr.f32.gmra.mrb[14].mxu0 %v3859_v9 }
 0x5e8   :  { %8129 = vmatprep.mubr.f32.mxu0 %v9408_v1 }
 0x5eb   :  { %8130 = vmatmul.mubr.f32.vlgmr.msra.gmra.mrb[12].mxu0 %v9405_v26 }
 0x5ec   :  { %8132 = vmatprep.mubr.f32.mxu0 %v9423_v17  ;;  %8600 = vmatpush3.bf16.msra.mxu0 %v8597_v0 }
 0x5ed   :  { %8602 = vmatprep.subr.bf16.mxu0 %v8589_v18 }
 0x5ef   :  { %8133 = vmatmul.mubr.f32.gmra.mrb[14].mxu0 %v9420_v2 }
 0x5f0   :  { %8139 = vmatprep.mubr.f32.mxu0 %v9414_v35  ;;  %v5802_v35 = vsub.f32 %v5800_v27, %v5801_v51 }
 0x5f3   :  { %8140 = vmatmul.mubr.f32.vlgmr.msra.gmra.mrb[12].mxu0 %v9411_v55  ;;  %v5808_v55 = vand.u32 4294901760, %v5807_v41 }
 0x5f4   :  { %8142 = vmatprep.mubr.f32.mxu0 %v9434_v54  ;;  %8604 = vmatpush3.bf16.msra.mxu0 %v8589_v18 }
 0x5f5   :  { %8606 = vmatprep.subr.bf16.mxu0 %v8605_v7  ;;  %v5809_v42 = vsub.f32 %v5807_v41, %v5808_v55 }
 0x5f7   :  { %8143 = vmatmul.mubr.f32.gmra.mrb[14].mxu0 %v9431_v52  ;;  %v5810_v38 = vand.u32 4294901760, %v5809_v42 }
 0x5f8   :  { %8149 = vmatprep.mubr.f32.mxu0 %v9426_v40  ;;  %v9495_v40 = vpop.f32.mrb[8].mxu1 }
 0x5f9   :  { %v9498_v45 = vpop.f32.mrb[9].mxu1 }
 0x5fa   :  { %v9501_v54 = vpop.f32.mrb[10].mxu1 }
 0x5fb   :  { %8150 = vmatmul.mubr.f32.vlgmr.msra.gmra.mrb[12].mxu0 %v9418_v29  ;;  %v5803_v29 = vand.u32 4294901760, %v5802_v35  ;;  %v9504_v56 = vpop.f32.mrb[11].mxu1 }
 0x5fc   :  { %8152 = vmatprep.mubr.f32.mxu0 %v9442_v62  ;;  %8608 = vmatpush3.bf16.msra.mxu0 %v8605_v7 }
 0x5fd   :  { %8610 = vmatprep.subr.bf16.mxu0 %v8589_v18  ;;  %v8617_v52 = vpack.c.bf16 %v5810_v38, %v5803_v29 }
 0x5ff   :  { %8153 = vmatmul.mubr.f32.gmra.mrb[14].mxu0 %v9439_v57  ;;  %v8621_v57 = vpack.c.bf16 %v5807_v41, %v5800_v27 }
 0x600   :  { %8159 = vmatprep.mubr.f32.mxu0 %v9408_v1 }
 0x603   :  { %8160 = vmatmul.mubr.f32.vlgmr.msra.gmra.mrb[12].mxu0 %v9405_v26 }
 0x604   :  { %8162 = vmatprep.mubr.f32.mxu0 %v9423_v17  ;;  %8612 = vmatpush3.bf16.msra.mxu0 %v8589_v18 }
 0x605   :  { %8614 = vmatprep.subr.bf16.mxu0 %v8613_v34 }
 0x607   :  { %8163 = vmatmul.mubr.f32.gmra.mrb[14].mxu0 %v9420_v2 }
 0x608   :  { %8169 = vmatprep.mubr.f32.mxu0 %v9408_v1 }
 0x60b   :  { %8170 = vmatmul.mubr.f32.vlgmr.msra.gmra.mrb[12].mxu0 %v9405_v26 }
 0x60c   :  { %8172 = vmatprep.mubr.f32.mxu0 %v9423_v17  ;;  %8616 = vmatpush3.bf16.msra.mxu0 %v8613_v34 }
 0x60d   :  { %8618 = vmatprep.subr.bf16.mxu0 %v8617_v52 }
 0x60f   :  { %8173 = vmatmul.mubr.f32.gmra.mrb[14].mxu0 %v9420_v2 }
 0x610   :  { %8179 = vmatprep.mubr.f32.mxu0 %v9363_v32  ;;  %v8629_v32 = vpack.c.bf16 %v5808_v55, %v5801_v51 }
 0x613   :  { %8180 = vmatmul.mubr.f32.vlgmr.msra.gmra.mrb[12].mxu0 %v9365_v39  ;;  %v4352_v39 = vld [vmem:[%s7109_s14 + $0x10] sm:$0xff] }
 0x614   :  { %8182 = vmatprep.mubr.f32.mxu0 %v9367_v43  ;;  %8620 = vmatpush3.bf16.msra.mxu0 %v8617_v52  ;;  %v4353_v43 = vld [vmem:[%s7109_s14 + $0x18] sm:$0xff] }
 0x615   :  { %8622 = vmatprep.subr.bf16.mxu0 %v8621_v57 }
 0x617   :  { %8183 = vmatmul.mubr.f32.gmra.mrb[14].mxu0 %v9371_v53  ;;  %v4383_v53 = vand.u32 4294901760, %v4353_v43 }
 0x618   :  { %8189 = vmatprep.mubr.f32.mxu0 %v9322_v22 }
 0x619   :  { %v4505_v3 = vsub.f32 %v4353_v43, %v4383_v53 }
 0x61b   :  { %8190 = vmatmul.mubr.f32.vlgmr.msra.gmra.mrb[12].mxu0 %v9324_v24 }
 0x61c   :  { %8192 = vmatprep.mubr.f32.mxu0 %v9326_v25  ;;  %8624 = vmatpush3.bf16.msra.mxu0 %v8621_v57 }
 0x61d   :  { %8626 = vmatprep.subr.bf16.mxu0 %v8613_v34 }
 0x61f   :  { %8193 = vmatmul.mubr.f32.gmra.mrb[14].mxu0 %v9329_v28 }
 0x620   :  { %8199 = vmatprep.mubr.f32.mxu0 %v9332_v46  ;;  %v4350_v46 = vld [vmem:[%s7109_s14] sm:$0xff] }
 0x623   :  { %8200 = vmatmul.mubr.f32.vlgmr.msra.gmra.mrb[12].mxu0 %v9335_v47  ;;  %v4351_v47 = vld [vmem:[%s7109_s14 + $0x8] sm:$0xff]  ;;  %s7123_s14 = sld [smem:[%s9725_s0 + %s8998_s11]]  }
 0x624   :  { %8202 = vmatprep.mubr.f32.mxu0 %v9338_v48  ;;  %8628 = vmatpush3.bf16.msra.mxu0 %v8613_v34  ;;  %v4374_v48 = vand.u32 4294901760, %v4350_v46 }
 0x625   :  { %8630 = vmatprep.subr.bf16.mxu0 %v8629_v32 }
 0x627   :  { %8203 = vmatmul.mubr.f32.gmra.mrb[14].mxu0 %v9341_v63  ;;  %v4377_v63 = vand.u32 4294901760, %v4351_v47 }
 0x628   :  { %8209 = vmatprep.mubr.f32.mxu0 %v9344_v5 }
 0x629   :  { %v9530_v5 = vpack.c.bf16 %v4377_v63, %v4374_v48 }
 0x62b   :  { %8210 = vmatmul.mubr.f32.vlgmr.msra.gmra.mrb[12].mxu0 %v9347_v30  ;;  %v4484_v30 = vsub.f32 %v4350_v46, %v4374_v48  ;;  %8542 = vmatprep.subr.bf16.mxu1 %v9530_v5  ;;  %v6292_v48 = vpop.permute.xlu1 %6291 }
 0x62c   :  { %8212 = vmatprep.mubr.f32.mxu0 %v9350_v31  ;;  %8632 = vmatpush3.bf16.msra.mxu0 %v8629_v32  ;;  %v4491_v31 = vsub.f32 %v4351_v47, %v4377_v63  ;;  %v6287_v63 = vpop.permute.xlu0 %6286 }
 0x62d   :  { %8634 = vmatprep.subr.bf16.mxu0 %v8613_v34  ;;  %v4485_v26 = vand.u32 4294901760, %v4484_v30  ;;  %8544 = vmatpush3.bf16.msra.mxu1 %v9530_v5 }
 0x62e   :  { %v4492_v1 = vand.u32 4294901760, %v4491_v31 }
 0x62f   :  { %8213 = vmatmul.mubr.f32.gmra.mrb[14].mxu0 %v9353_v33  ;;  %v4380_v33 = vand.u32 4294901760, %v4352_v39  ;;  %v4486_v17 = vsub.f32 %v4484_v30, %v4485_v26 }
 0x630   :  { %8219 = vmatprep.mubr.f32.mxu0 %v9322_v22  ;;  %v4493_v60 = vsub.f32 %v4491_v31, %v4492_v1  ;;  %v8573_v58 = vpack.c.bf16 %v4492_v1, %v4485_v26 }
 0x631   :  { %v9536_v2 = vpack.c.bf16 %v4383_v53, %v4380_v33  ;;  %v4498_v62 = vsub.f32 %v4352_v39, %v4380_v33  ;;  %v4487_v4 = vand.u32 4294901760, %v4486_v17  ;;  %v7167_v33 = vld [vmem:[%s7118_s22] ss:$0 sm:$0xff]  ;;  %v6297_v53 = vpop.permute.xlu0 %6296 }
 0x632   :  { %v4494_v6 = vand.u32 4294901760, %v4493_v60 }
 0x633   :  { %8220 = vmatmul.mubr.f32.vlgmr.msra.gmra.mrb[12].mxu0 %v9324_v24  ;;  %8546 = vmatprep.subr.bf16.mxu1 %v9536_v2  ;;  %v4499_v8 = vand.u32 4294901760, %v4498_v62  ;;  %v8561_v14 = vpack.c.bf16 %v4505_v3, %v4498_v62 }
 0x634   :  { %8222 = vmatprep.mubr.f32.mxu0 %v9326_v25  ;;  %8636 = vmatpush3.bf16.msra.mxu0 %v8613_v34  ;;  %v8549_v9 = vpack.c.bf16 %v4494_v6, %v4487_v4 }
 0x635   :  { %8548 = vmatpush3.bf16.msra.mxu1 %v9536_v2  ;;  %v4500_v10 = vsub.f32 %v4498_v62, %v4499_v8 }
 0x636   :  { %8550 = vmatprep.subr.bf16.mxu1 %v8549_v9 }
 0x637   :  { %8223 = vmatmul.mubr.f32.gmra.mrb[14].mxu0 %v9329_v28  ;;  %v4501_v12 = vand.u32 4294901760, %v4500_v10 }
 0x638   :  { %8229 = vmatprep.mubr.f32.mxu0 %v9322_v22  ;;  %v4506_v22 = vand.u32 4294901760, %v4505_v3 }
 0x63a   :  { %v4507_v37 = vsub.f32 %v4505_v3, %v4506_v22  ;;  %v8577_v61 = vpack.c.bf16 %v4506_v22, %v4499_v8 }
 0x63b   :  { %8230 = vmatmul.mubr.f32.vlgmr.msra.gmra.mrb[12].mxu0 %v9324_v24  ;;  %v8557_v24 = vpack.c.bf16 %v4491_v31, %v4484_v30  ;;  %v6302_v31 = vpop.permute.xlu1 %6301 }
 0x63c   :  { %8232 = vmatprep.mubr.f32.mxu0 %v9326_v25  ;;  %v4508_v11 = vand.u32 4294901760, %v4507_v37 }
 0x63e   :  { %v8553_v13 = vpack.c.bf16 %v4508_v11, %v4501_v12 }
 0x63f   :  { %8233 = vmatmul.mubr.f32.gmra.mrb[14].mxu0 %v9329_v28 }
 0x6ae   :  { %v8027_v18 = vpop.f32.mrb[8].mxu0 }
 0x6af   :  { %v4347_v59 = vmul.f32 %v8027_v18, %v9495_v40  ;;  %v4324_v25 = vpop.f32.mrb[9].mxu0 }
 0x6b0   :  { %v4346_v44 = vmul.f32 %v4324_v25, %v9498_v45 }
 0x6b1   :  { %v4365_v49 = vsel %vm151_vm0, %v4347_v59, 0 }
 0x6b2   :  { %v9546_v15 = vand.u32 4294901760, %v4365_v49  ;;  %v4362_v28 = vsel %vm151_vm0, %v4346_v44, 0  ;;  %v8030_v50 = vpop.f32.mrb[10].mxu0 }
 0x6b3   :  { %v4442_v0 = vand.u32 4294901760, %v4362_v28  ;;  %v4349_v7 = vmul.f32 %v8030_v50, %v9501_v54  ;;  %v4336_v19 = vpop.f32.mrb[11].mxu0 }
 0x6b4   :  { %v4453_v20 = vsub.f32 %v4365_v49, %v9546_v15  ;;  %v4348_v21 = vmul.f32 %v4336_v19, %v9504_v56 }
 0x6b5   :  { %v4443_v16 = vsub.f32 %v4362_v28, %v4442_v0  ;;  %v4371_v27 = vsel %vm151_vm0, %v4349_v7, 0 }
 0x6b6   :  { %v4454_v41 = vand.u32 4294901760, %v4453_v20  ;;  %v4472_v51 = vand.u32 4294901760, %v4371_v27  ;;  %v4368_v55 = vsel %vm151_vm0, %v4348_v21, 0 }
 0x6b7   :  { %v4462_v34 = vand.u32 4294901760, %v4368_v55  ;;  %v4444_v35 = vand.u32 4294901760, %v4443_v16 }
 0x6b8   :  { %v4455_v42 = vsub.f32 %v4453_v20, %v4454_v41  ;;  %v4473_v29 = vsub.f32 %v4371_v27, %v4472_v51 }
 0x6b9   :  { %v4463_v38 = vsub.f32 %v4368_v55, %v4462_v34  ;;  %v4445_v40 = vsub.f32 %v4443_v16, %v4444_v35 }
 0x6ba   :  { %v4474_v45 = vand.u32 4294901760, %v4473_v29  ;;  %v4456_v57 = vand.u32 4294901760, %v4455_v42 }
 0x6bb   :  { %v4446_v52 = vand.u32 4294901760, %v4445_v40  ;;  %v4464_v54 = vand.u32 4294901760, %v4463_v38 }
 0x6bc   :  { %v4475_v32 = vsub.f32 %v4473_v29, %v4474_v45 }
 0x6bd   :  { %8039 = vmatprep.mubr.f32.mxu1 %v4446_v52  ;;  %v4465_v56 = vsub.f32 %v4463_v38, %v4464_v54 }
 0x6be   :  { %8040 = vmatmul.mubr.f32.vlgmr.msra.gmra.mrb[12].mxu1 %v4456_v57  ;;  %v4476_v47 = vand.u32 4294901760, %v4475_v32 }
 0x6bf   :  { %8552 = vmatpush3.bf16.msra.mxu1 %v8549_v9  ;;  %v4466_v46 = vand.u32 4294901760, %v4465_v56 }
 0x6c0   :  { %8554 = vmatprep.subr.bf16.mxu1 %v8553_v13 }
 0x6c1   :  { %8042 = vmatprep.mubr.f32.mxu1 %v4466_v46 }
 0x6c2   :  { %8043 = vmatmul.mubr.f32.gmra.mrb[14].mxu1 %v4476_v47 }
 0x6c3   :  { %8556 = vmatpush3.bf16.msra.mxu1 %v8553_v13  ;;  %8053 = vmatprep.mubr.f32.mxu1 %v4442_v0 }
 0x6c4   :  { %8558 = vmatprep.subr.bf16.mxu1 %v8557_v24 }
 0x6c6   :  { %8054 = vmatmul.mubr.f32.vlgmr.msra.gmra.mrb[12].mxu1 %v9546_v15 }
 0x6c7   :  { %8056 = vmatprep.mubr.f32.mxu1 %v4462_v34  ;;  %8560 = vmatpush3.bf16.msra.mxu1 %v8557_v24 }
 0x6c8   :  { %8562 = vmatprep.subr.bf16.mxu1 %v8561_v14 }
 0x6ca   :  { %8057 = vmatmul.mubr.f32.gmra.mrb[14].mxu1 %v4472_v51 }
 0x6cb   :  { %8564 = vmatpush3.bf16.msra.mxu1 %v8561_v14  ;;  %8067 = vmatprep.mubr.f32.mxu1 %v4443_v16 }
 0x6cc   :  { %8566 = vmatprep.subr.bf16.mxu1 %v9530_v5 }
 0x6ce   :  { %8068 = vmatmul.mubr.f32.vlgmr.msra.gmra.mrb[12].mxu1 %v4453_v20 }
 0x6cf   :  { %8070 = vmatprep.mubr.f32.mxu1 %v4463_v38  ;;  %8568 = vmatpush3.bf16.msra.mxu1 %v9530_v5 }
 0x6d0   :  { %8570 = vmatprep.subr.bf16.mxu1 %v9536_v2 }
 0x6d2   :  { %8071 = vmatmul.mubr.f32.gmra.mrb[14].mxu1 %v4473_v29 }
 0x6d3   :  { %8572 = vmatpush3.bf16.msra.mxu1 %v9536_v2  ;;  %8081 = vmatprep.mubr.f32.mxu1 %v4444_v35 }
 0x6d4   :  { %8574 = vmatprep.subr.bf16.mxu1 %v8573_v58 }
 0x6d6   :  { %8082 = vmatmul.mubr.f32.vlgmr.msra.gmra.mrb[12].mxu1 %v4454_v41 }
 0x6d7   :  { %8084 = vmatprep.mubr.f32.mxu1 %v4464_v54  ;;  %8576 = vmatpush3.bf16.msra.mxu1 %v8573_v58 }
 0x6d8   :  { %8578 = vmatprep.subr.bf16.mxu1 %v8577_v61 }
 0x6da   :  { %8085 = vmatmul.mubr.f32.gmra.mrb[14].mxu1 %v4474_v45 }
 0x6db   :  { %8580 = vmatpush3.bf16.msra.mxu1 %v8577_v61  ;;  %8095 = vmatprep.mubr.f32.mxu1 %v4442_v0  ;;  %v7161_v61 = vld [vmem:[%s7110_s26] ss:$0 sm:$0xff] }
 0x6dc   :  { %8582 = vmatprep.subr.bf16.mxu1 %v9530_v5 }
 0x6de   :  { %8096 = vmatmul.mubr.f32.vlgmr.msra.gmra.mrb[12].mxu1 %v9546_v15 }
 0x6df   :  { %8098 = vmatprep.mubr.f32.mxu1 %v4462_v34  ;;  %8584 = vmatpush3.bf16.msra.mxu1 %v9530_v5  ;;  %v7166_v5 = vld [vmem:[%s7117_s18] ss:$0 sm:$0xff] }
 0x6e0   :  { %8586 = vmatprep.subr.bf16.mxu1 %v9536_v2  ;;  %v6311_v30 = vmul.f32 %v7166_v5, %v6292_v48  ;;  %v6310_v39 = vmul.f32 %v7166_v5, %v6287_v63  ;;  %v6313_v60 = vmul.f32 %v7166_v5, %v6302_v31  ;;  %v6312_v62 = vmul.f32 %v7166_v5, %v6297_v53 }
 0x6e2   :  { %8099 = vmatmul.mubr.f32.gmra.mrb[14].mxu1 %v4472_v51 }
 0x6e3   :  { %8588 = vmatpush3.bf16.msra.mxu1 %v9536_v2  ;;  %8109 = vmatprep.mubr.f32.mxu1 %v4442_v0 }
 0x6e6   :  { %8110 = vmatmul.mubr.f32.vlgmr.msra.gmra.mrb[12].mxu1 %v9546_v15 }
 0x6e7   :  { %8112 = vmatprep.mubr.f32.mxu1 %v4462_v34 }
 0x6ea   :  { %8113 = vmatmul.mubr.f32.gmra.mrb[14].mxu1 %v4472_v51 }
 0x70e   :  { %v8231_v43 = vpop.f32.mrb[12].mxu0 }
 0x70f   :  { %v6315_v26 = vadd.f32 %v8231_v43, %v6311_v30  ;;  %v6257_v1 = vpop.f32.mrb[13].mxu0 }
 0x710   :  { %v6314_v2 = vadd.f32 %v6310_v39, %v6257_v1 }
 0x711   :  { %v6326_v17 = vadd.f32 %v7167_v33, %v6315_v26 }
 0x712   :  { %v8234_v3 = vpop.f32.mrb[14].mxu0  ;;  %v6325_v4 = vadd.f32 %v7167_v33, %v6314_v2 }
 0x713   :  { %v6269_v6 = vpop.f32.mrb[15].mxu0  ;;  %v6332_v8 = vsel %vm151_vm0, %v6326_v17, 0.0  ;;  %v6317_v22 = vadd.f32 %v8234_v3, %v6313_v60 }
 0x714   :  { %v6316_v9 = vadd.f32 %v6312_v62, %v6269_v6  ;;  %6333 = vadd.xlane.f32.xlu1 %v6332_v8  ;;  %v6329_v10 = vsel %vm151_vm0, %v6325_v4, 0.0 }
 0x715   :  { %6330 = vadd.xlane.f32.xlu0 %v6329_v10  ;;  %v6328_v11 = vadd.f32 %v7167_v33, %v6317_v22 }
 0x716   :  { %v6327_v37 = vadd.f32 %v7167_v33, %v6316_v9 }
 0x717   :  { %v6338_v13 = vsel %vm151_vm0, %v6328_v11, 0.0 }
 0x718   :  { %v6335_v12 = vsel %vm151_vm0, %v6327_v37, 0.0 }
 0x719   :  { %6336 = vadd.xlane.f32.xlu0 %v6335_v12 }
 0x71d   :  { %6339 = vadd.xlane.f32.xlu0 %v6338_v13 }
 0x7a1   :  { %v6334_v58 = vpop.xlane.xlu1 %6333 }
 0x7a2   :  { %v6331_v24 = vpop.xlane.xlu0 %6330  ;;  %v6342_v18 = vmul.f32 0.03125, %v6334_v58 }
 0x7a3   :  { %v6341_v59 = vmul.f32 0.03125, %v6331_v24 }
 0x7a4   :  { %v9578_v50 = vsub.f32 %v6326_v17, %v6342_v18  ;;  %v7168_v18 = vld [vmem:[%s7119_s30] ss:$0 sm:$0xff] }
 0x7a5   :  { %v9581_v19 = vsub.f32 %v6325_v4, %v6341_v59 }
 0x7a6   :  { %v6337_v14 = vpop.xlane.xlu0 %6336  ;;  %v6350_v35 = vmul.f32 %v9578_v50, %v9578_v50 }
 0x7a7   :  { %v6343_v20 = vmul.f32 0.03125, %v6337_v14  ;;  %v6349_v38 = vmul.f32 %v9581_v19, %v9581_v19 }
 0x7a8   :  { %v6356_v40 = vsel %vm151_vm0, %v6350_v35, 0.0 }
 0x7a9   :  { %v9589_v42 = vsub.f32 %v6327_v37, %v6343_v20  ;;  %v6353_v52 = vsel %vm151_vm0, %v6349_v38, 0.0 }
 0x7aa   :  { %v6340_v25 = vpop.xlane.xlu0 %6339 }
 0x7ab   :  { %v6344_v0 = vmul.f32 0.03125, %v6340_v25  ;;  %v6351_v54 = vmul.f32 %v9589_v42, %v9589_v42 }
 0x7ad   :  { %v9584_v55 = vsub.f32 %v6328_v11, %v6344_v0  ;;  %v6359_v32 = vsel %vm151_vm0, %v6351_v54, 0.0 }
 0x7af   :  { %v6352_v45 = vmul.f32 %v9584_v55, %v9584_v55 }
 0x7b1   :  { %v6362_v57 = vsel %vm151_vm0, %v6352_v45, 0.0 }
 0x7b9   :  { %v8111_v44 = vpop.f32.mrb[12].mxu1 }
 0x7ba   :  { %v8693_v49 = vadd.f32 %v8111_v44, %v7161_v61  ;;  %v4965_v15 = vpop.f32.mrb[13].mxu1  ;;  %v7169_v44 = vld [vmem:[%s7120_s4] ss:$0 sm:$0xff] }
 0x7bb   :  { %v8694_v28 = vadd.f32 %v7161_v61, %v4965_v15 }
 0x7bc   :  { %v4990_v7 = vsel %vm151_vm0, %v8693_v49, 0.0 }
 0x7bd   :  { %v8114_v21 = vpop.f32.mrb[14].mxu1  ;;  %4991 = vadd.xlane.f32.xlu0 %v4990_v7  ;;  %v4987_v16 = vsel %vm151_vm0, %v8694_v28, 0.0 }
 0x7be   :  { %v8695_v27 = vadd.f32 %v8114_v21, %v7161_v61  ;;  %v4977_v41 = vpop.f32.mrb[15].mxu1  ;;  %4988 = vadd.xlane.f32.xlu1 %v4987_v16  ;;  %v7170_v16 = vld [vmem:[%s7121_s8] ss:$0 sm:$0xff] }
 0x7bf   :  { %v8696_v51 = vadd.f32 %v7161_v61, %v4977_v41 }
 0x7c0   :  { %v4996_v34 = vsel %vm151_vm0, %v8695_v27, 0.0 }
 0x7c1   :  { %4997 = vadd.xlane.f32.xlu0 %v4996_v34  ;;  %v4993_v29 = vsel %vm151_vm0, %v8696_v51, 0.0 }
 0x7c2   :  { %4994 = vadd.xlane.f32.xlu1 %v4993_v29 }
 0x7c5   :  { %6357 = vadd.xlane.f32.xlu0 %v6356_v40 }
 0x7c6   :  { %6354 = vadd.xlane.f32.xlu1 %v6353_v52 }
 0x7c9   :  { %6363 = vadd.xlane.f32.xlu0 %v6362_v57 }
 0x7ca   :  { %6360 = vadd.xlane.f32.xlu1 %v6359_v32 }
 0x84a   :  { %v4992_v56 = vpop.xlane.xlu0 %4991 }
 0x84b   :  { %v5000_v46 = vmul.f32 0.03125, %v4992_v56  ;;  %v4989_v47 = vpop.xlane.xlu1 %4988 }
 0x84c   :  { %v4999_v48 = vmul.f32 0.03125, %v4989_v47  ;;  %v70_v47 = vstv %s7114_s16 }
 0x84d   :  { %v9602_v63 = vsub.f32 %v8693_v49, %v5000_v46  ;;  %v72_v46 = vstv %s7122_s12  ;;  %71 = vst [vmem:[#allocation2] sm:$0x1] %v70_v47 }
 0x84e   :  { %v9604_v5 = vsub.f32 %v8694_v28, %v4999_v48  ;;  %v4998_v30 = vpop.xlane.xlu0 %4997  ;;  %73 = vst [vmem:[#allocation3] sm:$0x1] %v72_v46 }
 0x84f   :  { %v5002_v31 = vmul.f32 0.03125, %v4998_v30  ;;  %v4995_v39 = vpop.xlane.xlu1 %4994  ;;  %v5008_v43 = vmul.f32 %v9602_v63, %v9602_v63 }
 0x850   :  { %v5001_v33 = vmul.f32 0.03125, %v4995_v39  ;;  %v5007_v53 = vmul.f32 %v9604_v5, %v9604_v5 }
 0x851   :  { %v9610_v26 = vsub.f32 %v8695_v27, %v5002_v31  ;;  %v5014_v1 = vsel %vm151_vm0, %v5008_v43, 0.0 }
 0x852   :  { %v9613_v2 = vsub.f32 %v8696_v51, %v5001_v33  ;;  %5015 = vadd.xlane.f32.xlu0 %v5014_v1  ;;  %v6358_v17 = vpop.xlane.xlu0 %6357  ;;  %v5011_v60 = vsel %vm151_vm0, %v5007_v53, 0.0 }
 0x853   :  { %v6366_v62 = vmul.f32 0.03125, %v6358_v17  ;;  %v6355_v3 = vpop.xlane.xlu1 %6354  ;;  %5012 = vadd.xlane.f32.xlu1 %v5011_v60  ;;  %v5010_v4 = vmul.f32 %v9610_v26, %v9610_v26 }
 0x854   :  { %v6365_v6 = vmul.f32 0.03125, %v6355_v3  ;;  %v5009_v8 = vmul.f32 %v9613_v2, %v9613_v2 }
 0x855   :  { %v6370_v22 = vadd.f32 1e-05, %v6366_v62  ;;  %v5020_v9 = vsel %vm151_vm0, %v5010_v4, 0.0 }
 0x856   :  { %v6369_v10 = vadd.f32 1e-05, %v6365_v6  ;;  %5021 = vadd.xlane.f32.xlu0 %v5020_v9  ;;  %v6364_v37 = vpop.xlane.xlu0 %6363  ;;  %v5017_v12 = vsel %vm151_vm0, %v5009_v8, 0.0  ;;  %v7162_v6 = vld [vmem:[%s7111_s20] ss:$0 sm:$0xff] }
 0x857   :  { %8924 = vrsqrt.f32 %v6370_v22  ;;  %v6368_v11 = vmul.f32 0.03125, %v6364_v37  ;;  %5018 = vadd.xlane.f32.xlu1 %v5017_v12  ;;  %v6361_v13 = vpop.xlane.xlu1 %6360  ;;  %v7163_v9 = vld [vmem:[%s7112_s24] ss:$0 sm:$0xff] }
 0x858   :  { %8926 = vrsqrt.f32 %v6369_v10  ;;  %v6367_v24 = vmul.f32 0.03125, %v6361_v13 }
 0x859   :  { %v6372_v14 = vadd.f32 1e-05, %v6368_v11 }
 0x85a   :  { %v6371_v58 = vadd.f32 1e-05, %v6367_v24 }
 0x85b   :  { %8928 = vrsqrt.f32 %v6372_v14 }
 0x85c   :  { %8930 = vrsqrt.f32 %v6371_v58  ;;  %v7164_v58 = vld [vmem:[%s7113_s28] ss:$0 sm:$0xff] }
 0x861   :  { %v8925_v61 = vpop.eup %8924 }
 0x862   :  { %v8927_v59 = vpop.eup %8926  ;;  %v6378_v25 = vmul.f32 %v8925_v61, %v9578_v50 }
 0x863   :  { %v6377_v49 = vmul.f32 %v8927_v59, %v9581_v19 }
 0x864   :  { %v6389_v15 = vmul.f32 %v7168_v18, %v6378_v25 }
 0x865   :  { %v8929_v28 = vpop.eup %8928  ;;  %v6388_v0 = vmul.f32 %v7168_v18, %v6377_v49 }
 0x866   :  { %v8931_v7 = vpop.eup %8930  ;;  %v6400_v20 = vadd.f32 %v7169_v44, %v6389_v15  ;;  %v6380_v21 = vmul.f32 %v8929_v28, %v9584_v55 }
 0x867   :  { %v6399_v27 = vadd.f32 %v7169_v44, %v6388_v0  ;;  %v6379_v41 = vmul.f32 %v8931_v7, %v9589_v42  ;;  %v6469_v0 = vld [vmem:[%s9659_s2] sm:$0xff] }
 0x868   :  { %v6404_v51 = vmax.f32 %v6400_v20, 0.0  ;;  %v6391_v34 = vmul.f32 %v7168_v18, %v6380_v21 }
 0x869   :  { %v6403_v35 = vmax.f32 %v6399_v27, 0.0  ;;  %v6390_v29 = vmul.f32 %v7168_v18, %v6379_v41  ;;  %v6470_v41 = vld [vmem:[%s9659_s2 + $0x8] sm:$0xff] }
 0x86a   :  { %v6415_v38 = vmul.f32 %v7170_v16, %v6404_v51  ;;  %v6402_v50 = vadd.f32 %v7169_v44, %v6391_v34 }
 0x86b   :  { %v6414_v40 = vmul.f32 %v7170_v16, %v6403_v35  ;;  %v6401_v45 = vadd.f32 %v7169_v44, %v6390_v29  ;;  %v6474_v29 = vmul.f32 %v6470_v41, %v6470_v41 }
 0x86c   :  { %v6421_v19 = vsel %vm151_vm0, %v6415_v38, 0.0  ;;  %v6406_v52 = vmax.f32 %v6402_v50, 0.0 }
 0x86d   :  { %6422 = vadd.xlane.f32.xlu0 %v6421_v19  ;;  %v6418_v54 = vsel %vm151_vm0, %v6414_v40, 0.0  ;;  %v6405_v57 = vmax.f32 %v6401_v45, 0.0  ;;  %v6478_v38 = vadd.f32 %v6474_v29, %v6470_v41  ;;  %v6485_v29 = vld [vmem:[%s7096_s10] sm:$0xff] }
 0x86e   :  { %6419 = vadd.xlane.f32.xlu1 %v6418_v54  ;;  %v6417_v55 = vmul.f32 %v7170_v16, %v6406_v52  ;;  %v7171_v52 = vld [vmem:[#allocation3] ss:$0 sm:$0xff] }
 0x86f   :  { %v6416_v42 = vmul.f32 %v7170_v16, %v6405_v57 }
 0x870   :  { %v6427_v32 = vsel %vm151_vm0, %v6417_v55, 0.0 }
 0x871   :  { %6428 = vadd.xlane.f32.xlu0 %v6427_v32  ;;  %v6424_v56 = vsel %vm151_vm0, %v6416_v42, 0.0 }
 0x872   :  { %6425 = vadd.xlane.f32.xlu1 %v6424_v56 }
 0x8df   :  { %v5016_v48 = vpop.xlane.xlu0 %5015 }
 0x8e0   :  { %v5024_v30 = vmul.f32 0.03125, %v5016_v48  ;;  %v5013_v31 = vpop.xlane.xlu1 %5012 }
 0x8e1   :  { %v5023_v39 = vmul.f32 0.03125, %v5013_v31 }
 0x8e2   :  { %v5028_v43 = vadd.f32 1e-05, %v5024_v30 }
 0x8e3   :  { %v5027_v33 = vadd.f32 1e-05, %v5023_v39  ;;  %v5022_v53 = vpop.xlane.xlu0 %5021 }
 0x8e4   :  { %8932 = vrsqrt.f32 %v5028_v43  ;;  %v5026_v1 = vmul.f32 0.03125, %v5022_v53  ;;  %v5019_v17 = vpop.xlane.xlu1 %5018 }
 0x8e5   :  { %8934 = vrsqrt.f32 %v5027_v33  ;;  %v5025_v60 = vmul.f32 0.03125, %v5019_v17 }
 0x8e6   :  { %v5030_v62 = vadd.f32 1e-05, %v5026_v1  ;;  %v6471_v1 = vld [vmem:[%s9659_s2 + $0x10] sm:$0xff] }
 0x8e7   :  { %v5029_v3 = vadd.f32 1e-05, %v5025_v60  ;;  %v6472_v60 = vld [vmem:[%s9659_s2 + $0x18] sm:$0xff] }
 0x8e8   :  { %8936 = vrsqrt.f32 %v5030_v62 }
 0x8e9   :  { %8938 = vrsqrt.f32 %v5029_v3  ;;  %v6475_v3 = vmul.f32 %v6471_v1, %v6471_v1 }
 0x8ee   :  { %v8933_v4 = vpop.eup %8932 }
 0x8ef   :  { %v8935_v8 = vpop.eup %8934  ;;  %v5036_v22 = vmul.f32 %v8933_v4, %v9602_v63 }
 0x8f0   :  { %v5035_v10 = vmul.f32 %v8935_v8, %v9604_v5  ;;  %v6479_v8 = vadd.f32 %v6475_v3, %v6471_v1 }
 0x8f1   :  { %v5047_v37 = vmul.f32 %v7162_v6, %v5036_v22 }
 0x8f2   :  { %v8937_v12 = vpop.eup %8936  ;;  %v5046_v11 = vmul.f32 %v7162_v6, %v5035_v10 }
 0x8f3   :  { %v8939_v13 = vpop.eup %8938  ;;  %v5058_v24 = vadd.f32 %v7163_v9, %v5047_v37  ;;  %v5038_v14 = vmul.f32 %v8937_v12, %v9610_v26 }
 0x8f4   :  { %v5057_v61 = vadd.f32 %v7163_v9, %v5046_v11  ;;  %v5037_v63 = vmul.f32 %v8939_v13, %v9613_v2  ;;  %v6473_v2 = vmul.f32 %v6469_v0, %v6469_v0 }
 0x8f5   :  { %v5062_v18 = vmax.f32 %v5058_v24, 0.0  ;;  %v5049_v5 = vmul.f32 %v7162_v6, %v5038_v14 }
 0x8f6   :  { %v5061_v59 = vmax.f32 %v5057_v61, 0.0  ;;  %v5048_v25 = vmul.f32 %v7162_v6, %v5037_v63  ;;  %v6477_v35 = vadd.f32 %v6473_v2, %v6469_v0  ;;  %v6476_v6 = vmul.f32 %v6472_v60, %v6472_v60 }
 0x8f7   :  { %v5073_v44 = vmul.f32 %v7164_v58, %v5062_v18  ;;  %v5060_v49 = vadd.f32 %v7163_v9, %v5049_v5 }
 0x8f8   :  { %v5072_v15 = vmul.f32 %v7164_v58, %v5061_v59  ;;  %v5059_v28 = vadd.f32 %v7163_v9, %v5048_v25  ;;  %8940 = vrcp.f32 %v6477_v35  ;;  %v6480_v22 = vadd.f32 %v6476_v6, %v6472_v60  ;;  %v7165_v9 = vld [vmem:[#allocation2] ss:$0 sm:$0xff]  ;;  %v6486_v35 = vld [vmem:[%s7096_s10 + $0x8] sm:$0xff] }
 0x8f9   :  { %v5079_v7 = vsel %vm151_vm0, %v5073_v44, 0.0  ;;  %v5064_v20 = vmax.f32 %v5060_v49, 0.0  ;;  %8942 = vrcp.f32 %v6478_v38 }
 0x8fa   :  { %5080 = vadd.xlane.f32.xlu0 %v5079_v7  ;;  %v5076_v26 = vsel %vm151_vm0, %v5072_v15, 0.0  ;;  %v5063_v21 = vmax.f32 %v5059_v28, 0.0  ;;  %v6423_v45 = vpop.xlane.xlu0 %6422  ;;  %v6538_v28 = vshrl.u32 %v1875_v23, 7 }
 0x8fb   :  { %5077 = vadd.xlane.f32.xlu1 %v5076_v26  ;;  %v5075_v16 = vmul.f32 %v7164_v58, %v5064_v20  ;;  %v6420_v19 = vpop.xlane.xlu1 %6419  ;;  %v6438_v54 = vadd.f32 %v7171_v52, %v6423_v45  ;;  %v7176_v20 = vld [vmem:[%s7095_s6] ss:$0 sm:$0xff] }
 0x8fc   :  { %v5074_v27 = vmul.f32 %v7164_v58, %v5063_v21  ;;  %v6437_v57 = vadd.f32 %v7171_v52, %v6420_v19  ;;  %v6539_v7 = vadd.s32 8, %v6538_v28  ;;  %vm6545_vm10 = vcmp.eq.s32.totalorder %v6538_v28, %v7176_v20 }
 0x8fd   :  { %v5085_v51 = vsel %vm151_vm0, %v5075_v16, 0.0  ;;  %v7173_v32 = vmul.f32 -1.442695, %v6438_v54  ;;  %v9676_v26 = vsel %vm6545_vm10, 1.0, %v8975_v36 }
 0x8fe   :  { %5086 = vadd.xlane.f32.xlu0 %v5085_v51  ;;  %v5082_v34 = vsel %vm151_vm0, %v5074_v27, 0.0  ;;  %v6429_v55 = vpop.xlane.xlu0 %6428  ;;  %v7172_v46 = vmul.f32 -1.442695, %v6437_v57  ;;  %vm6546_vm11 = vcmp.eq.s32.totalorder %v6539_v7, %v7176_v20  ;;  %v6552_v21 = vsel %vm151_vm0, %v9676_v26, 0 }
 0x8ff   :  { %5083 = vadd.xlane.f32.xlu1 %v5082_v34  ;;  %v6426_v42 = vpop.xlane.xlu1 %6425  ;;  %v6440_v56 = vadd.f32 %v7171_v52, %v6429_v55  ;;  %8944 = vpow2.f32 %v7173_v32  ;;  %v9680_v16 = vsub.f32 %v6552_v21, %v6552_v21  ;;  %v9690_v34 = vsel %vm6546_vm11, 1.0, %v8975_v36 }
 0x900   :  { %v6439_v47 = vadd.f32 %v7171_v52, %v6426_v42  ;;  %8946 = vpow2.f32 %v7172_v46  ;;  %v6488_v42 = vld [vmem:[%s7096_s10 + $0x18] sm:$0xff] }
 0x901   :  { %v7175_v48 = vmul.f32 -1.442695, %v6440_v56  ;;  %v6628_v2 = vand.u32 4294901760, %v9680_v16  ;;  %v6487_v56 = vld [vmem:[%s7096_s10 + $0x10] sm:$0xff] }
 0x902   :  { %v8941_v50 = vpop.eup %8940  ;;  %v7174_v30 = vmul.f32 -1.442695, %v6439_v47 }
 0x903   :  { %v8943_v40 = vpop.eup %8942  ;;  %8948 = vpow2.f32 %v7175_v48  ;;  %v6629_v23 = vsub.f32 %v9680_v16, %v6628_v2 }
 0x904   :  { %8950 = vpow2.f32 %v7174_v30 }
 0x905   :  { %v6630_v27 = vand.u32 4294901760, %v6629_v23 }
 0x907   :  { %8243 = vmatprep.mubr.f32.mxu1 %v6630_v27 }
 0x909   :  { %v8945_v31 = vpop.eup %8944 }
 0x90a   :  { %v8947_v39 = vpop.eup %8946  ;;  %v6454_v43 = vadd.f32 1.0, %v8945_v31 }
 0x90b   :  { %v6453_v53 = vadd.f32 1.0, %v8947_v39 }
 0x90c   :  { %8952 = vrcp.f32 %v6454_v43 }
 0x90d   :  { %v8949_v33 = vpop.eup %8948  ;;  %8954 = vrcp.f32 %v6453_v53 }
 0x90e   :  { %v8951_v17 = vpop.eup %8950  ;;  %v6456_v62 = vadd.f32 1.0, %v8949_v33 }
 0x90f   :  { %v6455_v4 = vadd.f32 1.0, %v8951_v17 }
 0x910   :  { %6515 = vperm.xlu1 %8914, %v8941_v50   ;;  %8956 = vrcp.f32 %v6456_v62  ;;  %v6555_v50 = vsel %vm151_vm0, %v9690_v34, 0 }
 0x911   :  { %8958 = vrcp.f32 %v6455_v4  ;;  %v9694_v54 = vsub.f32 %v6555_v50, %v6555_v50 }
 0x912   :  { %8960 = vrcp.f32 %v6479_v8 }
 0x913   :  { %8962 = vrcp.f32 %v6480_v22  ;;  %v6638_v48 = vand.u32 4294901760, %v9694_v54 }
 0x914   :  { %6520 = vperm.xlu1 %8914, %v8943_v40  }
 0x915   :  { %v6639_v22 = vsub.f32 %v9694_v54, %v6638_v48 }
 0x916   :  { %v8953_v11 = vpop.eup %8952 }
 0x917   :  { %v8955_v24 = vpop.eup %8954 }
 0x91a   :  { %v8957_v5 = vpop.eup %8956 }
 0x91b   :  { %v8959_v25 = vpop.eup %8958 }
 0x91c   :  { %v8961_v15 = vpop.eup %8960 }
 0x91d   :  { %v8963_v0 = vpop.eup %8962 }
 0x987   :  { %v5081_v10 = vpop.xlane.xlu0 %5080 }
 0x988   :  { %v5096_v37 = vadd.f32 %v7165_v9, %v5081_v10  ;;  %v5078_v12 = vpop.xlane.xlu1 %5077 }
 0x989   :  { %v5095_v13 = vadd.f32 %v7165_v9, %v5078_v12 }
 0x98a   :  { %v6466_v14 = vmul.f32 %v8953_v11, %v5096_v37 }
 0x98b   :  { %v6465_v58 = vmul.f32 %v8955_v24, %v5095_v13  ;;  %v5087_v61 = vpop.xlane.xlu0 %5086 }
 0x98c   :  { %v5098_v63 = vadd.f32 %v7165_v9, %v5087_v61  ;;  %v5084_v18 = vpop.xlane.xlu1 %5083  ;;  %6496 = vperm.xlu0 %8915, %v6466_v14  }
 0x98d   :  { %v5097_v59 = vadd.f32 %v7165_v9, %v5084_v18  ;;  %6491 = vperm.xlu1 %8914, %v6465_v58   ;;  %v6640_v58 = vand.u32 4294901760, %v6639_v22 }
 0x98e   :  { %v6468_v44 = vmul.f32 %v8957_v5, %v5098_v63 }
 0x98f   :  { %v6467_v49 = vmul.f32 %v8959_v25, %v5097_v59 }
 0x990   :  { %v6516_v41 = vpop.permute.xlu1 %6515 }
 0x991   :  { %6501 = vperm.xlu0 %8915, %v6467_v49   ;;  %6506 = vperm.xlu1 %8914, %v6468_v44  }
 0x994   :  { %v6521_v51 = vpop.permute.xlu1 %6520 }
 0x995   :  { %6525 = vperm.xlu0 %8915, %v8961_v15   ;;  %6530 = vperm.xlu1 %8914, %v8963_v0  }
 0xa0b   :  { %v6497_v38 = vpop.permute.xlu0 %6496 }
 0xa0c   :  { %v6510_v40 = vmul.f32 %v6497_v38, %v6486_v35  ;;  %v6492_v45 = vpop.permute.xlu1 %6491 }
 0xa0d   :  { %v6509_v19 = vmul.f32 %v6492_v45, %v6485_v29 }
 0xa0e   :  { %v6534_v52 = vmul.f32 %v6521_v51, %v6510_v40 }
 0xa0f   :  { %v6533_v57 = vmul.f32 %v6516_v41, %v6509_v19 }
 0xa10   :  { %v6561_v55 = vand.u32 4294901760, %v6534_v52  ;;  %v6507_v32 = vpop.permute.xlu1 %6506  ;;  %v6502_v46 = vpop.permute.xlu0 %6501 }
 0xa11   :  { %v6558_v36 = vand.u32 4294901760, %v6533_v57  ;;  %v6512_v39 = vmul.f32 %v6507_v32, %v6488_v42  ;;  %v6511_v43 = vmul.f32 %v6502_v46, %v6487_v56 }
 0xa12   :  { %v6655_v47 = vsub.f32 %v6534_v52, %v6561_v55 }
 0xa13   :  { %v9697_v30 = vpack.c.bf16 %v6561_v55, %v6558_v36  ;;  %v6648_v31 = vsub.f32 %v6533_v57, %v6558_v36 }
 0xa14   :  { %v6531_v33 = vpop.permute.xlu1 %6530  ;;  %v6526_v53 = vpop.permute.xlu0 %6525  ;;  %v6656_v1 = vand.u32 4294901760, %v6655_v47 }
 0xa15   :  { %v6536_v17 = vmul.f32 %v6531_v33, %v6512_v39  ;;  %v6535_v60 = vmul.f32 %v6526_v53, %v6511_v43  ;;  %8638 = vmatprep.subr.bf16.mxu1 %v9697_v30  ;;  %v6649_v62 = vand.u32 4294901760, %v6648_v31  ;;  %v8653_v25 = vpack.c.bf16 %v6655_v47, %v6648_v31 }
 0xa16   :  { %8640 = vmatpush3.bf16.msra.mxu1 %v9697_v30  ;;  %v6657_v3 = vsub.f32 %v6655_v47, %v6656_v1 }
 0xa17   :  { %v6567_v4 = vand.u32 4294901760, %v6536_v17  ;;  %v6564_v6 = vand.u32 4294901760, %v6535_v60  ;;  %v6650_v8 = vsub.f32 %v6648_v31, %v6649_v62  ;;  %v8669_v49 = vpack.c.bf16 %v6656_v1, %v6649_v62 }
 0xa18   :  { %v6658_v9 = vand.u32 4294901760, %v6657_v3 }
 0xa19   :  { %v6669_v10 = vsub.f32 %v6536_v17, %v6567_v4  ;;  %v8641_v37 = vpack.c.bf16 %v6567_v4, %v6564_v6  ;;  %v6662_v12 = vsub.f32 %v6535_v60, %v6564_v6  ;;  %v6651_v11 = vand.u32 4294901760, %v6650_v8 }
 0xa1b   :  { %v6670_v13 = vand.u32 4294901760, %v6669_v10  ;;  %v6663_v24 = vand.u32 4294901760, %v6662_v12  ;;  %8642 = vmatprep.subr.bf16.mxu1 %v8641_v37  ;;  %v8645_v14 = vpack.c.bf16 %v6658_v9, %v6651_v11  ;;  %v8657_v44 = vpack.c.bf16 %v6669_v10, %v6662_v12 }
 0xa1c   :  { %8644 = vmatpush3.bf16.msra.mxu1 %v8641_v37 }
 0xa1d   :  { %8646 = vmatprep.subr.bf16.mxu1 %v8645_v14  ;;  %v6664_v61 = vsub.f32 %v6662_v12, %v6663_v24  ;;  %v6671_v63 = vsub.f32 %v6669_v10, %v6670_v13  ;;  %v8673_v15 = vpack.c.bf16 %v6670_v13, %v6663_v24 }
 0xa1f   :  { %8244 = vmatmul.mubr.f32.vlgmr.msra.gmra.mrb[16].mxu1 %v6640_v58  ;;  %v6665_v18 = vand.u32 4294901760, %v6664_v61  ;;  %v6672_v5 = vand.u32 4294901760, %v6671_v63 }
 0xa20   :  { %8648 = vmatpush3.bf16.msra.mxu1 %v8645_v14  ;;  %8254 = vmatprep.mubr.msk.f32.mxu1 %vm151_vm0, %v9676_v26 }
 0xa21   :  { %v8649_v59 = vpack.c.bf16 %v6672_v5, %v6665_v18 }
 0xa23   :  { %8650 = vmatprep.subr.bf16.mxu1 %v8649_v59 }
 0xa24   :  { %8652 = vmatpush3.bf16.msra.mxu1 %v8649_v59 }
 0xa25   :  { %8654 = vmatprep.subr.bf16.mxu1 %v8653_v25 }
 0xa27   :  { %8255 = vmatmul.mubr.msk.f32.vlgmr.msra.gmra.mrb[16].mxu1 %vm151_vm0, %v9690_v34 }
 0xa28   :  { %8656 = vmatpush3.bf16.msra.mxu1 %v8653_v25  ;;  %8265 = vmatprep.mubr.f32.mxu1 %v9680_v16 }
 0xa29   :  { %8658 = vmatprep.subr.bf16.mxu1 %v8657_v44 }
 0xa2c   :  { %8660 = vmatpush3.bf16.msra.mxu1 %v8657_v44 }
 0xa2d   :  { %8662 = vmatprep.subr.bf16.mxu1 %v9697_v30 }
 0xa2f   :  { %8266 = vmatmul.mubr.f32.vlgmr.msra.gmra.mrb[16].mxu1 %v9694_v54 }
 0xa30   :  { %8664 = vmatpush3.bf16.msra.mxu1 %v9697_v30  ;;  %8276 = vmatprep.mubr.f32.mxu1 %v6628_v2 }
 0xa31   :  { %8666 = vmatprep.subr.bf16.mxu1 %v8641_v37 }
 0xa34   :  { %8668 = vmatpush3.bf16.msra.mxu1 %v8641_v37 }
 0xa35   :  { %8670 = vmatprep.subr.bf16.mxu1 %v8669_v49 }
 0xa37   :  { %8277 = vmatmul.mubr.f32.vlgmr.msra.gmra.mrb[16].mxu1 %v6638_v48 }
 0xa38   :  { %8672 = vmatpush3.bf16.msra.mxu1 %v8669_v49  ;;  %8287 = vmatprep.mubr.msk.f32.mxu1 %vm151_vm0, %v9676_v26 }
 0xa39   :  { %8674 = vmatprep.subr.bf16.mxu1 %v8673_v15 }
 0xa3c   :  { %8676 = vmatpush3.bf16.msra.mxu1 %v8673_v15 }
 0xa3d   :  { %8678 = vmatprep.subr.bf16.mxu1 %v9697_v30 }
 0xa3f   :  { %8288 = vmatmul.mubr.msk.f32.vlgmr.msra.gmra.mrb[16].mxu1 %vm151_vm0, %v9690_v34 }
 0xa40   :  { %8680 = vmatpush3.bf16.msra.mxu1 %v9697_v30  ;;  %8298 = vmatprep.mubr.msk.f32.mxu1 %vm151_vm0, %v9676_v26 }
 0xa41   :  { %8682 = vmatprep.subr.bf16.mxu1 %v8641_v37 }
 0xa44   :  { %8684 = vmatpush3.bf16.msra.mxu1 %v8641_v37 }
 0xa47   :  { %8299 = vmatmul.mubr.msk.f32.vlgmr.msra.gmra.mrb[16].mxu1 %vm151_vm0, %v9690_v34 }
 0xb1a   :  { %v8300_v28 = vpop.f32.mrb[16].mxu1 }
 0xb1b   :  { %7087 = vst.msk [vmem:[%s7123_s14 + $0x8] sm:$0xff] %vm7085_vm12, %v8300_v28  ;;  %v7075_v0 = vpop.f32.mrb[17].mxu1 }
 0xb1c   :  { %7086 = vst.msk [vmem:[%s7123_s14] sm:$0xff] %vm7085_vm12, %v7075_v0 }

</bundles_post_ra>
